<compile_context>
chip_gen: v7x
topology: tpu7x:2x2x1
jax: 0.10.0
libtpu: 0.0.40
codegen_flags: <defaults>
</compile_context>

<pallas_src>
import numpy as np
import jax
import jax.numpy as jnp
from jax.experimental import pallas as pl
from jax.experimental.pallas import tpu as pltpu

# ----------------------------- config (matches MelSpectrogramConfig) -----------
SR = 22050
WIN_LENGTH = 1024
HOP_LENGTH = 256
N_FFT = 1024
F_MIN = 0.0
F_MAX = 8000.0
N_MELS = 80
POWER = 1.0                                  # magnitude spectrogram
PAD = (WIN_LENGTH - HOP_LENGTH) // 2         # 384, constant zero-pad both sides
CLAMP_MIN = 1e-5

N_FREQ = N_FFT // 2 + 1                      # 513 rFFT bins
N_MELS_PAD = 128                             # lane-dense output width
N_CHUNKS = N_FFT // HOP_LENGTH               # 4 hop-chunks per frame


def _round_up(x, m):
    return ((x + m - 1) // m) * m


# ----------------------------- librosa-style (slaney) mel filterbank -----------
def _hz_to_mel(f):
    f = np.asarray(f, dtype=np.float64)
    f_sp = 200.0 / 3.0
    mels = f / f_sp
    min_log_hz = 1000.0
    min_log_mel = min_log_hz / f_sp
    logstep = np.log(6.4) / 27.0
    return np.where(f >= min_log_hz,
                    min_log_mel + np.log(np.maximum(f, 1e-10) / min_log_hz) / logstep,
                    mels)


def _mel_to_hz(m):
    m = np.asarray(m, dtype=np.float64)
    f_sp = 200.0 / 3.0
    freqs = f_sp * m
    min_log_hz = 1000.0
    min_log_mel = min_log_hz / f_sp
    logstep = np.log(6.4) / 27.0
    return np.where(m >= min_log_mel,
                    min_log_hz * np.exp(logstep * (m - min_log_mel)),
                    freqs)


def mel_filterbank(sr, n_fft, n_mels, fmin, fmax):
    n_freq = n_fft // 2 + 1
    fftfreqs = np.linspace(0.0, sr / 2.0, n_freq)
    mels = np.linspace(_hz_to_mel(fmin), _hz_to_mel(fmax), n_mels + 2)
    mel_f = _mel_to_hz(mels)
    fdiff = np.diff(mel_f)
    ramps = mel_f[:, None] - fftfreqs[None, :]
    weights = np.zeros((n_mels, n_freq), dtype=np.float64)
    for i in range(n_mels):
        lower = -ramps[i] / fdiff[i]
        upper = ramps[i + 2] / fdiff[i + 1]
        weights[i] = np.maximum(0.0, np.minimum(lower, upper))
    enorm = 2.0 / (mel_f[2:n_mels + 2] - mel_f[:n_mels])     # slaney norm
    weights *= enorm[:, None]
    return weights                                           # [n_mels, n_freq]


# ----------------------------- deterministic parameter setup -------------------
def build_constants():
    # Hann window (periodic, as torch.hann_window default); win_length == n_fft.
    n = np.arange(WIN_LENGTH, dtype=np.float64)
    window = 0.5 - 0.5 * np.cos(2.0 * np.pi * n / WIN_LENGTH)            # [n_fft]

    # Mel filterbank; only bins with nonzero mel weight need to be produced by the
    # DFT (f_max = 8 kHz < Nyquist => bins >= ~372 have zero weight everywhere).
    fb = mel_filterbank(SR, N_FFT, N_MELS, F_MIN, F_MAX)                 # [n_mels, n_freq]
    nz = np.nonzero(fb.sum(axis=0) > 0.0)[0]
    last = int(nz.max()) + 1 if nz.size else 1
    n_freq_used = min(_round_up(last, 128), _round_up(N_FREQ, 128))      # 384 here
    k_real = min(n_freq_used, N_FREQ)

    # Fused real-DFT basis [cos | sin], trimmed to the used bins, bf16 for the MXU.
    t = np.arange(N_FFT, dtype=np.float64)[:, None]                      # [n_fft, 1]
    k = np.arange(k_real, dtype=np.float64)[None, :]                     # [1, k_real]
    ang = 2.0 * np.pi * t * k / N_FFT
    cos_mat = np.zeros((N_FFT, n_freq_used), dtype=np.float64)
    sin_mat = np.zeros((N_FFT, n_freq_used), dtype=np.float64)
    cos_mat[:, :k_real] = np.cos(ang)
    sin_mat[:, :k_real] = np.sin(ang)
    basis = np.concatenate([cos_mat, sin_mat], axis=1)                   # [n_fft, 2*nfu]

    # Mel filterbank as [n_freq_used, N_MELS_PAD] so magnitudes right-multiply it
    # (lane-dense 128-wide output; columns 80..127 are zero and sliced off later).
    fb_pad = np.zeros((n_freq_used, N_MELS_PAD), dtype=np.float64)
    fb_pad[:k_real, :N_MELS] = fb.T[:k_real, :]

    return (jnp.asarray(window[None, :], dtype=jnp.float32),             # [1, n_fft]
            jnp.asarray(basis, dtype=jnp.bfloat16),                      # [n_fft, 2*nfu]
            jnp.asarray(fb_pad, dtype=jnp.float32))                      # [nfu, 128]


# ----------------------------- Pallas kernel -----------------------------------
def mel_kernel(audio_ref, halo_ref, window_ref, basis_ref, melfb_ref, out_ref):
    # audio_ref  : (1, FT, HOP)   f32   hop-reshaped audio, rows f*FT .. f*FT+FT-1
    # halo_ref   : (1, 8,  HOP)   f32   next 8 hop rows (frame overlap across tiles)
    # window_ref : (1, N_FFT)     f32   Hann window
    # basis_ref  : (N_FFT, 2*nfu) bf16  fused [cos | sin] real-DFT basis
    # melfb_ref  : (nfu, 128)     f32   slaney mel filterbank (zero-padded to 128 mels)
    # out_ref    : (1, FT, 128)   f32   log-mel for this frame tile
    ft = out_ref.shape[1]
    nfu = melfb_ref.shape[0]

    # Hop rows available to this tile: FT + 8 (frame t uses rows t .. t+3).
    a = jnp.concatenate([audio_ref[0, :, :], halo_ref[0, :, :]], axis=0)   # (FT+8, HOP)

    # Real DFT, accumulated over the 4 hop-chunks of each frame; the Hann window is
    # fused into each chunk.  bf16 MXU matmuls, f32 accumulation.
    ri = jnp.zeros((ft, 2 * nfu), dtype=jnp.float32)
    for s in range(N_CHUNKS):
        w_s = window_ref[:, s * HOP_LENGTH:(s + 1) * HOP_LENGTH]           # (1, HOP)
        chunk = (a[s:s + ft, :] * w_s).astype(jnp.bfloat16)                # (FT, HOP)
        ri = ri + jnp.dot(chunk,
                          basis_ref[s * HOP_LENGTH:(s + 1) * HOP_LENGTH, :],
                          preferred_element_type=jnp.float32)              # (FT, 2*nfu)

    real = ri[:, :nfu]
    imag = ri[:, nfu:]
    mag = jnp.sqrt(real * real + imag * imag)                              # power = 1.0

    # Mel projection (f32) + clamp + log.
    mel = jnp.dot(mag, melfb_ref[...], preferred_element_type=jnp.float32)  # (FT, 128)
    out_ref[...] = jnp.log(jnp.maximum(mel, CLAMP_MIN))[None, :, :]


# ----------------------------- wrapper ------------------------------------------
def mel_spectrogram(audio, frame_tile=256):
    """audio: [B, T] float32  ->  [B, n_mels, T'] float32 (matches the PyTorch module)."""
    B, T = audio.shape
    T_pad = T + 2 * PAD
    assert T_pad >= N_FFT, "audio too short for one frame"
    n_frames = 1 + (T_pad - N_FFT) // HOP_LENGTH

    # Frame tile (multiple of 8) and grid over frame tiles.
    ft = min(frame_tile, _round_up(n_frames, 8))
    n_tiles = pl.cdiv(n_frames, ft)

    # Hop-reshaped audio: [B, n_hops, HOP]; needs n_tiles*ft + 8 rows so the last
    # tile's 8-row halo block is in bounds.  Extra rows are zero (sliced off later).
    n_hops_total = n_tiles * ft + 8
    total_len = n_hops_total * HOP_LENGTH
    audio_padded = jnp.pad(audio, ((0, 0), (PAD, total_len - T - PAD)))
    audio3 = audio_padded.reshape(B, n_hops_total, HOP_LENGTH)

    window, basis, fb_pad = build_constants()

    out = pl.pallas_call(
        mel_kernel,
        out_shape=jax.ShapeDtypeStruct((B, n_tiles * ft, N_MELS_PAD), jnp.float32),
        grid_spec=pltpu.PrefetchScalarGridSpec(
            num_scalar_prefetch=0,
            grid=(B, n_tiles),
            in_specs=[
                # main audio block: ft hop rows of this frame tile
                pl.BlockSpec((1, ft, HOP_LENGTH), lambda b, f: (b, f, 0)),
                # halo block: next 8 hop rows (covers the 3-row frame overlap)
                pl.BlockSpec((1, 8, HOP_LENGTH),
                             lambda b, f: (b, (f + 1) * (ft // 8), 0)),
                # constants: constant index_map -> fetched once by the pipeline
                pl.BlockSpec((1, N_FFT), lambda b, f: (0, 0)),
                pl.BlockSpec(basis.shape, lambda b, f: (0, 0)),
                pl.BlockSpec(fb_pad.shape, lambda b, f: (0, 0)),
            ],
            out_specs=pl.BlockSpec((1, ft, N_MELS_PAD), lambda b, f: (b, f, 0)),
        ),
        compiler_params=pltpu.CompilerParams(
            dimension_semantics=("parallel", "parallel"),
            vmem_limit_bytes=48 << 20),   # headroom on v7x (64 MiB phys); ample elsewhere
    )(audio3, audio3, window, basis, fb_pad)

    # Layout glue: drop padded frames / padded mel columns, go to [B, n_mels, T'].
    return jnp.transpose(out[:, :n_frames, :N_MELS], (0, 2, 1))


# ----------------------------- pure-numpy reference for sanity -----------------
def reference(audio_np):
    B, T = audio_np.shape
    a = np.pad(audio_np.astype(np.float64), ((0, 0), (PAD, PAD)))
    T_pad = T + 2 * PAD
    n_frames = 1 + (T_pad - N_FFT) // HOP_LENGTH
    n = np.arange(WIN_LENGTH)
    window = 0.5 - 0.5 * np.cos(2.0 * np.pi * n / WIN_LENGTH)
    fb = mel_filterbank(SR, N_FFT, N_MELS, F_MIN, F_MAX)          # [n_mels, n_freq]
    out = np.zeros((B, N_MELS, n_frames))
    for b in range(B):
        frames = np.stack([a[b, t * HOP_LENGTH:t * HOP_LENGTH + N_FFT] * window
                           for t in range(n_frames)], axis=0)      # [T', n_fft]
        spec = np.abs(np.fft.rfft(frames, n=N_FFT, axis=-1))       # [T', n_freq]
        mel = spec @ fb.T                                          # [T', n_mels]
        out[b] = np.log(np.maximum(mel, CLAMP_MIN)).T
    return out


if __name__ == "__main__":
    key = jax.random.PRNGKey(0)
    B, T = 2, 1024                     # small: 4 output frames
    audio = jax.random.normal(key, (B, T), dtype=jnp.float32)

    result = mel_spectrogram(audio)
    jax.block_until_ready(result)

    n_frames = 1 + (T + 2 * PAD - N_FFT) // HOP_LENGTH
    assert result.shape == (B, N_MELS, n_frames)
    ref = reference(np.asarray(audio))
    # Tolerance 2e-2: DFT inputs/basis are bf16 (f32 MXU accumulation); log-mel
    # error stays well inside this for the slaney filterbank.
    np.testing.assert_allclose(np.asarray(result), ref, rtol=2e-2, atol=2e-2)

    print("KERNEL_OK")
</pallas_src>

<mosaic_0001>
module attributes {stable_mosaic.version = 11 : i64} {
  func.func @mel_kernel(%arg0: i32, %arg1: i32, %arg2: memref<1x8x256xf32, #tpu.memory_space<vmem>>, %arg3: memref<1x8x256xf32, #tpu.memory_space<vmem>>, %arg4: memref<1x1024xf32, #tpu.memory_space<vmem>>, %arg5: memref<1024x768xbf16, #tpu.memory_space<vmem>>, %arg6: memref<384x128xf32, #tpu.memory_space<vmem>>, %arg7: memref<1x8x128xf32, #tpu.memory_space<vmem>>) attributes {dimension_semantics = [#tpu.dimension_semantics<parallel>, #tpu.dimension_semantics<parallel>], iteration_bounds = array<i64: 2, 1>, scalar_prefetch = 0 : i64, scratch_operands = 0 : i64, tpu.core_type = #tpu.core_type<tc>, window_params = [{transform_indices = @transform_0, window_bounds = array<i64: 1, 8, 256>}, {transform_indices = @transform_1, window_bounds = array<i64: 1, 8, 256>}, {pipeline_mode = #tpu.pipeline_mode<synchronous>, transform_indices = @transform_2, window_bounds = array<i64: 1, 1024>}, {pipeline_mode = #tpu.pipeline_mode<synchronous>, transform_indices = @transform_3, window_bounds = array<i64: 1024, 768>}, {pipeline_mode = #tpu.pipeline_mode<synchronous>, transform_indices = @transform_4, window_bounds = array<i64: 384, 128>}, {transform_indices = @transform_5, window_bounds = array<i64: 1, 8, 128>}]} {
    %c0 = arith.constant 0 : index
    %c0_0 = arith.constant 0 : index
    %c0_1 = arith.constant 0 : index
    %0 = vector.load %arg2[%c0, %c0_0, %c0_1] : memref<1x8x256xf32, #tpu.memory_space<vmem>>, vector<1x8x256xf32>
    %1 = vector.shape_cast %0 : vector<1x8x256xf32> to vector<8x256xf32>
    %c0_2 = arith.constant 0 : index
    %c0_3 = arith.constant 0 : index
    %c0_4 = arith.constant 0 : index
    %2 = vector.load %arg3[%c0_2, %c0_3, %c0_4] : memref<1x8x256xf32, #tpu.memory_space<vmem>>, vector<1x8x256xf32>
    %3 = vector.shape_cast %2 : vector<1x8x256xf32> to vector<8x256xf32>
    %4 = tpu.concatenate %1, %3 in 0 : vector<8x256xf32>, vector<8x256xf32> -> vector<16x256xf32>
    %cst = arith.constant 0.000000e+00 : f32
    %5 = vector.broadcast %cst : f32 to vector<8x768xf32>
    %c0_5 = arith.constant 0 : index
    %c0_6 = arith.constant 0 : index
    %6 = vector.load %arg4[%c0_5, %c0_6] : memref<1x1024xf32, #tpu.memory_space<vmem>>, vector<1x256xf32>
    %7 = vector.extract_strided_slice %4 {offsets = [0, 0], sizes = [8, 256], strides = [1, 1]} : vector<16x256xf32> to vector<8x256xf32>
    %8 = vector.broadcast %6 : vector<1x256xf32> to vector<8x256xf32>
    %9 = arith.mulf %7, %8 : vector<8x256xf32>
    %10 = arith.truncf %9 : vector<8x256xf32> to vector<8x256xbf16>
    %c0_7 = arith.constant 0 : index
    %c0_8 = arith.constant 0 : index
    %11 = vector.load %arg5[%c0_7, %c0_8] : memref<1024x768xbf16, #tpu.memory_space<vmem>>, vector<256x768xbf16>
    %cst_9 = arith.constant dense<0.000000e+00> : vector<8x768xf32>
    %12 = tpu.matmul %10, %11, %cst_9 {dimension_numbers = #tpu.dot_dimension_numbers<[1], [0], [0], [1], [0, 0, 1, 1], [], []>} : vector<8x256xbf16>, vector<256x768xbf16>, vector<8x768xf32> -> vector<8x768xf32>
    %13 = arith.addf %5, %12 : vector<8x768xf32>
    %c0_10 = arith.constant 0 : index
    %c256 = arith.constant 256 : index
    %14 = vector.load %arg4[%c0_10, %c256] : memref<1x1024xf32, #tpu.memory_space<vmem>>, vector<1x256xf32>
    %15 = vector.extract_strided_slice %4 {offsets = [1, 0], sizes = [8, 256], strides = [1, 1]} : vector<16x256xf32> to vector<8x256xf32>
    %16 = vector.broadcast %14 : vector<1x256xf32> to vector<8x256xf32>
    %17 = arith.mulf %15, %16 : vector<8x256xf32>
    %18 = arith.truncf %17 : vector<8x256xf32> to vector<8x256xbf16>
    %c256_11 = arith.constant 256 : index
    %c0_12 = arith.constant 0 : index
    %19 = vector.load %arg5[%c256_11, %c0_12] : memref<1024x768xbf16, #tpu.memory_space<vmem>>, vector<256x768xbf16>
    %cst_13 = arith.constant dense<0.000000e+00> : vector<8x768xf32>
    %20 = tpu.matmul %18, %19, %cst_13 {dimension_numbers = #tpu.dot_dimension_numbers<[1], [0], [0], [1], [0, 0, 1, 1], [], []>} : vector<8x256xbf16>, vector<256x768xbf16>, vector<8x768xf32> -> vector<8x768xf32>
    %21 = arith.addf %13, %20 : vector<8x768xf32>
    %c0_14 = arith.constant 0 : index
    %c512 = arith.constant 512 : index
    %22 = vector.load %arg4[%c0_14, %c512] : memref<1x1024xf32, #tpu.memory_space<vmem>>, vector<1x256xf32>
    %23 = vector.extract_strided_slice %4 {offsets = [2, 0], sizes = [8, 256], strides = [1, 1]} : vector<16x256xf32> to vector<8x256xf32>
    %24 = vector.broadcast %22 : vector<1x256xf32> to vector<8x256xf32>
    %25 = arith.mulf %23, %24 : vector<8x256xf32>
    %26 = arith.truncf %25 : vector<8x256xf32> to vector<8x256xbf16>
    %c512_15 = arith.constant 512 : index
    %c0_16 = arith.constant 0 : index
    %27 = vector.load %arg5[%c512_15, %c0_16] : memref<1024x768xbf16, #tpu.memory_space<vmem>>, vector<256x768xbf16>
    %cst_17 = arith.constant dense<0.000000e+00> : vector<8x768xf32>
    %28 = tpu.matmul %26, %27, %cst_17 {dimension_numbers = #tpu.dot_dimension_numbers<[1], [0], [0], [1], [0, 0, 1, 1], [], []>} : vector<8x256xbf16>, vector<256x768xbf16>, vector<8x768xf32> -> vector<8x768xf32>
    %29 = arith.addf %21, %28 : vector<8x768xf32>
    %c0_18 = arith.constant 0 : index
    %c768 = arith.constant 768 : index
    %30 = vector.load %arg4[%c0_18, %c768] : memref<1x1024xf32, #tpu.memory_space<vmem>>, vector<1x256xf32>
    %31 = vector.extract_strided_slice %4 {offsets = [3, 0], sizes = [8, 256], strides = [1, 1]} : vector<16x256xf32> to vector<8x256xf32>
    %32 = vector.broadcast %30 : vector<1x256xf32> to vector<8x256xf32>
    %33 = arith.mulf %31, %32 : vector<8x256xf32>
    %34 = arith.truncf %33 : vector<8x256xf32> to vector<8x256xbf16>
    %c768_19 = arith.constant 768 : index
    %c0_20 = arith.constant 0 : index
    %35 = vector.load %arg5[%c768_19, %c0_20] : memref<1024x768xbf16, #tpu.memory_space<vmem>>, vector<256x768xbf16>
    %cst_21 = arith.constant dense<0.000000e+00> : vector<8x768xf32>
    %36 = tpu.matmul %34, %35, %cst_21 {dimension_numbers = #tpu.dot_dimension_numbers<[1], [0], [0], [1], [0, 0, 1, 1], [], []>} : vector<8x256xbf16>, vector<256x768xbf16>, vector<8x768xf32> -> vector<8x768xf32>
    %37 = arith.addf %29, %36 : vector<8x768xf32>
    %38 = vector.extract_strided_slice %37 {offsets = [0, 0], sizes = [8, 384], strides = [1, 1]} : vector<8x768xf32> to vector<8x384xf32>
    %39 = vector.extract_strided_slice %37 {offsets = [0, 384], sizes = [8, 384], strides = [1, 1]} : vector<8x768xf32> to vector<8x384xf32>
    %40 = arith.mulf %38, %38 : vector<8x384xf32>
    %41 = arith.mulf %39, %39 : vector<8x384xf32>
    %42 = arith.addf %40, %41 : vector<8x384xf32>
    %43 = math.sqrt %42 : vector<8x384xf32>
    %c0_22 = arith.constant 0 : index
    %c0_23 = arith.constant 0 : index
    %44 = vector.load %arg6[%c0_22, %c0_23] : memref<384x128xf32, #tpu.memory_space<vmem>>, vector<384x128xf32>
    %cst_24 = arith.constant dense<0.000000e+00> : vector<8x128xf32>
    %45 = tpu.matmul %43, %44, %cst_24 {dimension_numbers = #tpu.dot_dimension_numbers<[1], [0], [0], [1], [0, 0, 1, 1], [], []>} : vector<8x384xf32>, vector<384x128xf32>, vector<8x128xf32> -> vector<8x128xf32>
    %cst_25 = arith.constant 9.99999974E-6 : f32
    %46 = vector.broadcast %cst_25 : f32 to vector<8x128xf32>
    %47 = arith.maximumf %45, %46 : vector<8x128xf32>
    %48 = math.log %47 : vector<8x128xf32>
    %49 = vector.shape_cast %48 : vector<8x128xf32> to vector<1x8x128xf32>
    %c0_26 = arith.constant 0 : index
    %c0_27 = arith.constant 0 : index
    %c0_28 = arith.constant 0 : index
    %50 = vector.load %arg7[%c0_26, %c0_27, %c0_28] : memref<1x8x128xf32, #tpu.memory_space<vmem>>, vector<1x8x128xf32>
    tpu.vector_store %arg7[%c0_26, %c0_27, %c0_28], %49 {strides = array<i32>} : memref<1x8x128xf32, #tpu.memory_space<vmem>>, vector<1x8x128xf32>,
    return
  }
  func.func @transform_0(%arg0: i32, %arg1: i32) -> (i32, i32, i32) {
    %c0_i32 = arith.constant 0 : i32
    %c0_i32_0 = arith.constant 0 : i32
    return %arg0, %arg1, %c0_i32 : i32, i32, i32
  }
  func.func @transform_1(%arg0: i32, %arg1: i32) -> (i32, i32, i32) {
    %c1_i32 = arith.constant 1 : i32
    %0 = arith.addi %arg1, %c1_i32 : i32
    %c1_i32_0 = arith.constant 1 : i32
    %1 = arith.muli %0, %c1_i32_0 : i32
    %c0_i32 = arith.constant 0 : i32
    %c0_i32_1 = arith.constant 0 : i32
    return %arg0, %1, %c0_i32 : i32, i32, i32
  }
  func.func @transform_2(%arg0: i32, %arg1: i32) -> (i32, i32) {
    %c0_i32 = arith.constant 0 : i32
    %c0_i32_0 = arith.constant 0 : i32
    %c0_i32_1 = arith.constant 0 : i32
    return %c0_i32, %c0_i32_0 : i32, i32
  }
  func.func @transform_3(%arg0: i32, %arg1: i32) -> (i32, i32) {
    %c0_i32 = arith.constant 0 : i32
    %c0_i32_0 = arith.constant 0 : i32
    %c0_i32_1 = arith.constant 0 : i32
    return %c0_i32, %c0_i32_0 : i32, i32
  }
  func.func @transform_4(%arg0: i32, %arg1: i32) -> (i32, i32) {
    %c0_i32 = arith.constant 0 : i32
    %c0_i32_0 = arith.constant 0 : i32
    %c0_i32_1 = arith.constant 0 : i32
    return %c0_i32, %c0_i32_0 : i32, i32
  }
  func.func @transform_5(%arg0: i32, %arg1: i32) -> (i32, i32, i32) {
    %c0_i32 = arith.constant 0 : i32
    %c0_i32_0 = arith.constant 0 : i32
    return %arg0, %arg1, %c0_i32 : i32, i32, i32
  }
}

</mosaic_0001>

<bundles_post_ra>
// kernel: tpu_custom_call.1
= control target key start
LH: loop header
LB: loop body
LE: loop exit
PB: predicated region body
PF: predicated region fallthrough
CT: control target
= control target key end

     0   :  { %s5617_s0 = inlined_call_operand.hbm [shape: f32[2,16,256], index: 0, kind: input, shape index: {}]   ;;  %s5618_s1 = inlined_call_operand.hbm [shape: f32[2,16,256], index: 1, kind: input, shape index: {}]   ;;  %s5619_s2 = inlined_call_operand.hbm [shape: f32[1,1024], index: 2, kind: input, shape index: {}]   ;;  %s5620_s3 = inlined_call_operand.hbm [shape: bf16[1024,768], index: 3, kind: input, shape index: {}]   ;;  %s5621_s4 = inlined_call_operand.hbm [shape: f32[384,128], index: 4, kind: input, shape index: {}]   ;;  %s5622_s5 = inlined_call_operand.hbm [shape: f32[2,8,128], index: 5, kind: output, shape index: {}]  }
   0x1   :  { %5628 = sst [smem:[#allocation18_spill]] %s5619_s2 }
   0x2   :  { %5629 = sst [smem:[#allocation19_spill]] %s5620_s3 }
   0x3   :  { %5630 = sst [smem:[#allocation20_spill]] %s5621_s4 }
   0x4   :  { %10 = vsyncpa [#allocation3], 0 }
   0x5   :  { %12 = vsyncpa [#allocation3 + $0x1], 0 }
   0x6   :  { %13 = vsyncpa [#allocation6], 0 }
   0x7   :  { %15 = vsyncpa [#allocation6 + $0x1], 0 }
   0x8   :  { %16 = vsyncpa [#allocation9], 0 }
   0x9   :  { %17 = vsyncpa [#allocation4], 0 }
   0xa   :  { %19 = vsyncpa [#allocation4 + $0x1], 0  ;;  %s5204_s18 = smov 0   ;;  %s5206_s19 = smov 0  }
   0xb   :  { %s5208_s20 = smov 0   ;;  %s5210_s21 = smov 0  }
   0xc   :  { %s5212_s22 = smov 0   ;;  %s5214_s23 = smov 0  }
   0xd LB: > { %s5235_s24 = sadd.s32 4294967295, %s5159_s23   ;;  %s3643_s25 = sadd.s32 4294967294, %s5159_s23   ;;  %s5159_s23 = sphi %s5214_s23, %s25_s23   ;;  %s5155_s22 = sphi %s5212_s22, %s5657_s22   ;;  %s5151_s21 = sphi %s5210_s21, %s5656_s21   ;;  %s5147_s20 = sphi %s5208_s20, %s5655_s20   ;;  %s5143_s19 = sphi %s5206_s19, %s5654_s19   ;;  %s5139_s18 = sphi %s5204_s18, %s5653_s18  }
   0xe   : > { %p59_p0 = scmp.ne.s32.totalorder %s5143_s19, %s5139_s18  ;;  %p5623_p1 = scmp.eq.s32.totalorder %s5235_s24, 0 }
   0xf   : > { %p184_p3 = scmp.eq.s32.totalorder %s3643_s25, 1  ;;  %p3644_p5 = scmp.ge.s32.totalorder %s5159_s23, 1 }
  0x10   : > { %p5244_p4 = por %p5623_p1, %p59_p0  ;;  %p191_p7 = scmp.lt.s32.totalorder %s5159_s23, 3 }
  0x11   : > { %p5249_p6 = por %p184_p3, %p59_p0  ;;  %s5161_s29 = smov [#allocation7]  }
  0x12   : > { %s5631_s26 = scalar_select %p5244_p4, 1, 0 }
  0x13   : > { %s5632_s27 = scalar_select %p5249_p6, 1, 0 }
  0x14   : > { %p5254_p8 = pnand %p3644_p5, %p191_p7  ;;  %s204_s30 = sshll.u32 %s5161_s29, 4  ;;  %s205_s30 = int_to_ptr.vmem [resolvable:$true] %s204_s30 }
  0x15   : > { %s5162_s6 = smov [#allocation8]   ;;  %s5163_s9 = smov [#allocation10]  }
  0x16   : > { %s5633_s28 = scalar_select %p5254_p8, 1, 0 }
  0x17   : > { %p4245_p10 = pneg %p5254_p8  ;;  %s214_s7 = sshll.u32 %s5162_s6, 4  ;;  %s5267_s7 = int_to_ptr.vmem [resolvable:$true] %s214_s7 }
  0x18   : > { %s5269_s10 = sshll.u32 %s5163_s9, 4  ;;  %s5635_s2 = sld [smem:[#allocation18_spill]]  ;;  %s228_s10 = int_to_ptr.vmem [resolvable:$true] %s5269_s10 }
  0x19   : > { %p5263_p11 = pnand %p4245_p10, %p5623_p1 }
  0x1b   : > { %p5279_p13 = pneg %p5263_p11 }
  0x1e   : > { %s4920_s13 = scalar_lea.hbm %s5635_s2, 128 }
  0x1f   : > { %p4921_p12 = scmp.ne.s32.totalorder %s5635_s2, %s4920_s13  ;;  %p4927_p5 = scmp.lt.u32.totalorder %s4920_s13, %s5635_s2 }
  0x21   : > { %p4923_p0 = pnand %p5279_p13, %p4921_p12 }
  0x23   : > { %p4924_p3 = pneg %p4923_p0 }
  0x25   : > { %p4929_p7 = pnand %p4927_p5, %p4924_p3 }
  0x27   : > { %4932 = shalt.err (!%p4929_p7)
}
  0x28   : > { %s4933_s29 = scalar_lea.vmem %s205_s30, 128  ;;  %p4941_p2 = scmp.lt.s32.totalorder %s205_s30, %s205_s30 }
  0x29   : > { %p4934_p10 = scmp.ne.s32.totalorder %s205_s30, %s4933_s29  ;;  %p4942_p6 = scmp.lt.s32.totalorder %s4933_s29, %s4933_s29 }
  0x2b   : > { %p4936_p9 = pnand %p4934_p10, %p5279_p13  ;;  %p4943_p4 = por %p4942_p6, %p4941_p2 }
  0x2d   : > { %p4937_p1 = pneg %p4936_p9 }
  0x2f   : > { %p4944_p8 = pnand %p4943_p4, %p4937_p1 }
  0x31   : > { %4947 = shalt.err (!%p4944_p8)
}
  0x32   : > { %4248 = dma.hbm_to_vmem [thread:$0]  (!%p5263_p11), %s5635_s2, 128, %s205_s30, [#allocation6]  }
  0x33   : > { %s5637_s3 = sld [smem:[#allocation19_spill]] }
  0x39   : > { %s4948_s13 = scalar_lea.hbm %s5637_s3, 49152 }
  0x3a   : > { %p4949_p9 = scmp.ne.s32.totalorder %s5637_s3, %s4948_s13  ;;  %p4955_p1 = scmp.lt.u32.totalorder %s4948_s13, %s5637_s3 }
  0x3c   : > { %p4951_p12 = pnand %p4949_p9, %p5279_p13 }
  0x3e   : > { %p4952_p2 = pneg %p4951_p12 }
  0x40   : > { %p4957_p4 = pnand %p4955_p1, %p4952_p2 }
  0x42   : > { %4960 = shalt.err (!%p4957_p4)
}
  0x43   : > { %s4961_s30 = scalar_lea.vmem %s5267_s7, 49152  ;;  %p4969_p3 = scmp.lt.s32.totalorder %s5267_s7, %s5267_s7 }
  0x44   : > { %p4962_p6 = scmp.ne.s32.totalorder %s5267_s7, %s4961_s30  ;;  %p4970_p5 = scmp.lt.s32.totalorder %s4961_s30, %s4961_s30 }
  0x46   : > { %p4964_p8 = pnand %p4962_p6, %p5279_p13  ;;  %p4971_p7 = por %p4970_p5, %p4969_p3 }
  0x48   : > { %p4965_p0 = pneg %p4964_p8 }
  0x4a   : > { %p4972_p10 = pnand %p4971_p7, %p4965_p0 }
  0x4c   : > { %4975 = shalt.err (!%p4972_p10)
}
  0x4d   : > { %s5164_s29 = smov 384   ;;  %s5165_s6 = smov 24  }
  0x4e   : > { %4251 = dma.hbm_to_vmem [thread:$0]  (!%p5263_p11), %s5637_s3, 49152, %s5267_s7, [#allocation9], %s5164_s29, %s5164_s29, %s5165_s6  }
  0x4f   : > { %s5638_s4 = sld [smem:[#allocation20_spill]] }
  0x55   : > { %s4976_s14 = scalar_lea.hbm %s5638_s4, 6144 }
  0x56   : > { %p4977_p9 = scmp.ne.s32.totalorder %s5638_s4, %s4976_s14  ;;  %p4983_p1 = scmp.lt.u32.totalorder %s4976_s14, %s5638_s4 }
  0x58   : > { %p4979_p12 = pnand %p4977_p9, %p5279_p13 }
  0x5a   : > { %p4980_p2 = pneg %p4979_p12 }
  0x5c   : > { %p4985_p4 = pnand %p4983_p1, %p4980_p2 }
  0x5e   : > { %4988 = shalt.err (!%p4985_p4)
}
  0x5f   : > { %s4989_s9 = scalar_lea.vmem %s228_s10, 6144  ;;  %p4997_p3 = scmp.lt.s32.totalorder %s228_s10, %s228_s10 }
  0x60   : > { %p4990_p6 = scmp.ne.s32.totalorder %s228_s10, %s4989_s9  ;;  %p4998_p5 = scmp.lt.s32.totalorder %s4989_s9, %s4989_s9 }
  0x62   : > { %p4992_p8 = pnand %p4990_p6, %p5279_p13  ;;  %p4999_p7 = por %p4998_p5, %p4997_p3 }
  0x64   : > { %p4993_p0 = pneg %p4992_p8 }
  0x66   : > { %p5000_p10 = pnand %p4999_p7, %p4993_p0 }
  0x68   : > { %5003 = shalt.err (!%p5000_p10)
}
  0x69   : > { %s5166_s7 = smov 128   ;;  %s5167_s16 = smov 8  }
  0x6a   : > { %4254 = dma.hbm_to_vmem [thread:$0]  (!%p5263_p11), %s5638_s4, 6144, %s228_s10, [#allocation9], %s5166_s7, %s5166_s7, %s5167_s16  }
  0x6b   : > { %s46_s11 = sadd.s32 1, %s5147_s20  ;;  %s37_s12 = sadd.s32 1, %s5155_s22 }
  0x6c   : > { %p53_p13 = scmp.ne.s32.totalorder %s5147_s20, %s5143_s19  ;;  %p39_p9 = scmp.ge.s32.totalorder %s37_s12, 2 }
  0x6d   : > { %p54_p12 = scmp.eq.s32.totalorder %s5159_s23, 0  ;;  %p5639_p2 = scmp.eq.s32.totalorder %s5235_s24, 1 }
  0x6e   : > { %p4269_p4 = scmp.lt.s32.totalorder %s5159_s23, 2  ;;  %s5659_s12 = smov (%p39_p9, %s37_s12), 0 }
  0x6f   : > { %p5344_p1 = por %p5639_p2, %p53_p13  ;;  %5641 = sst [smem:[#allocation17_spill]] %s5659_s12 }
  0x70   : > { %p55_p6 = por %p54_p12, %p53_p13  ;;  %s241_s8 = sand.u32 1, %s5147_s20  }
  0x71   : > { %s5640_s13 = scalar_select %p5344_p1, 1, 0 }
  0x72   : > { %s41_s14 = ssub.s32 %s5155_s22, %s5659_s12  ;;  %s5354_s10 = sshll.u32 %s241_s8, 4 }
  0x73   : > { %p44_p11 = scmp.eq.s32.totalorder %s41_s14, 0  ;;  %s4050_s15 = sshll.u32 %s5155_s22, 9 }
  0x74   : > { %s5363_s9 = scalar_lea.hbm %s5617_s0, %s4050_s15  ;;  %s245_s7 = scalar_lea.vmem [#allocation2], %s5354_s10 }
  0x75   : > { %s5358_s17 = scalar_select %p44_p11, %s5147_s20, %s46_s11  }
  0x76   : > { %s255_s16 = sshll.u32 %s245_s7, 4  ;;  %p5370_p8 = pnand %p4269_p4, %p55_p6  ;;  %s5366_s16 = int_to_ptr.vmem [resolvable:$true] %s255_s16 }
  0x77   : > { %s5377_s14 = scalar_lea.hbm %s5618_s1, %s4050_s15  ;;  %s262_s25 = sand.u32 1, %s5159_s23  }
  0x78   : > { %s242_s30 = scalar_lea.sflag [#allocation3], %s241_s8  ;;  %s5004_s2 = scalar_lea.hbm %s5363_s9, 256 }
  0x79   : > { %p5005_p0 = scmp.ne.s32.totalorder %s5363_s9, %s5004_s2  ;;  %p5006_p3 = pneg %p5370_p8 }
  0x7a   : > { %s5009_s4 = scalar_lea.hbm %s5617_s0, 1024  ;;  %p5010_p10 = scmp.lt.u32.totalorder %s5363_s9, %s5617_s0 }
  0x7b   : > { %p5007_p5 = pnand %p5006_p3, %p5005_p0  ;;  %p5011_p13 = scmp.lt.u32.totalorder %s5009_s4, %s5004_s2 }
  0x7c   : > { %p5013_p12 = scmp.lt.u32.totalorder %s5004_s2, %s5363_s9 }
  0x7d   : > { %p5008_p7 = pneg %p5007_p5  ;;  %p5012_p9 = por %p5011_p13, %p5010_p10 }
  0x7f   : > { %p5014_p2 = por %p5013_p12, %p5012_p9 }
  0x81   : > { %p5015_p4 = pnand %p5014_p2, %p5008_p7 }
  0x83   : > { %5018 = shalt.err (!%p5015_p4)
}
  0x84   : > { %s5019_s8 = scalar_lea.vmem %s5366_s16, 256  ;;  %s5168_s3 = smov [#allocation2]  }
  0x85   : > { %p5020_p6 = scmp.ne.s32.totalorder %s5366_s16, %s5019_s8  ;;  %s5024_s15 = sshll.u32 %s5168_s3, 4  ;;  %s5025_s15 = int_to_ptr.vmem [resolvable:$false] %s5024_s15 }
  0x86   : > { %s5026_s12 = scalar_lea.vmem %s5025_s15, 512  ;;  %p5027_p5 = scmp.lt.s32.totalorder %s5366_s16, %s5025_s15 }
  0x87   : > { %p5022_p11 = pnand %p5020_p6, %p5006_p3  ;;  %p5028_p10 = scmp.lt.s32.totalorder %s5026_s12, %s5019_s8 }
  0x89   : > { %p5023_p0 = pneg %p5022_p11  ;;  %p5029_p13 = por %p5028_p10, %p5027_p5 }
  0x8b   : > { %p5030_p9 = pnand %p5029_p13, %p5023_p0 }
  0x8d   : > { %5033 = shalt.err (!%p5030_p9)
}
  0x8e   : > { %4258 = dma.hbm_to_vmem [thread:$0]  (!%p5370_p8), %s5363_s9, 256, %s5366_s16, %s242_s30  }
  0x8f   : > { %s5406_s2 = scalar_lea.hbm %s5377_s14, 256  ;;  %s266_s4 = scalar_lea.vmem [#allocation5], %s5354_s10 }
  0x90   : > { %s277_s11 = sshll.u32 %s266_s4, 4  ;;  %s263_s7 = scalar_lea.sflag [#allocation6], %s262_s25  ;;  %s278_s11 = int_to_ptr.vmem [resolvable:$true] %s277_s11 }
  0x91   : > { %s5064_s6 = scalar_lea.hbm %s5377_s14, 512  ;;  %s5039_s9 = scalar_lea.hbm %s5618_s1, 1024 }
  0x92   : > { %p5035_p7 = scmp.ne.s32.totalorder %s5406_s2, %s5064_s6  ;;  %p5040_p4 = scmp.lt.u32.totalorder %s5406_s2, %s5618_s1 }
  0x93   : > { %p5041_p6 = scmp.lt.u32.totalorder %s5039_s9, %s5064_s6  ;;  %p5043_p0 = scmp.lt.u32.totalorder %s5064_s6, %s5406_s2 }
  0x94   : > { %p5037_p12 = pnand %p5035_p7, %p5006_p3 }
  0x95   : > { %p5042_p11 = por %p5041_p6, %p5040_p4 }
  0x96   : > { %p5038_p2 = pneg %p5037_p12 }
  0x97   : > { %p5044_p5 = por %p5043_p0, %p5042_p11 }
  0x99   : > { %p5045_p10 = pnand %p5044_p5, %p5038_p2 }
  0x9b   : > { %5048 = shalt.err (!%p5045_p10)
}
  0x9c   : > { %s5049_s10 = scalar_lea.vmem %s278_s11, 256  ;;  %s5169_s14 = smov [#allocation5]  }
  0x9d   : > { %p5050_p13 = scmp.ne.s32.totalorder %s278_s11, %s5049_s10  ;;  %s5054_s25 = sshll.u32 %s5169_s14, 4  ;;  %s5055_s25 = int_to_ptr.vmem [resolvable:$false] %s5054_s25 }
  0x9e   : > { %s5056_s15 = scalar_lea.vmem %s5055_s25, 512  ;;  %p5057_p12 = scmp.lt.s32.totalorder %s278_s11, %s5055_s25 }
  0x9f   : > { %p5052_p9 = pnand %p5050_p13, %p5006_p3  ;;  %p5058_p1 = scmp.lt.s32.totalorder %s5056_s15, %s5049_s10 }
  0xa1   : > { %p5053_p7 = pneg %p5052_p9  ;;  %p5059_p4 = por %p5058_p1, %p5057_p12 }
  0xa3   : > { %p5060_p6 = pnand %p5059_p4, %p5053_p7 }
  0xa5   : > { %5063 = shalt.err (!%p5060_p6)
}
  0xa6   : > { %4261 = dma.hbm_to_vmem [thread:$0]  (!%p5370_p8), %s5406_s2, 256, %s278_s11, %s263_s7  }
  0xa7   : > { %p5643_p2 = scmp.ne.s32.totalorder %s5633_s28, 0 }
  0xa8   : > { %s5433_s12 = sand.u32 (!%p5643_p2), 1, %s5143_s19   ;;  %p5644_p1 = scmp.ne.s32.totalorder (!%p5643_p2), %s5631_s26, 0 }
  0xa9   : > { %286 = sbr.rel (%p5643_p2) target bundleno = 1053 (0x41d), region = 40  ;;  %s3656_s4 = sshll.u32 (!%p5643_p2), %s5433_s12, 4 }
  0xaa   : > { %s289_s6 = scalar_lea.sflag (!%p5643_p2), [#allocation3], %s5433_s12  ;;  %s5437_s8 = scalar_lea.vmem (!%p5643_p2), [#allocation2], %s3656_s4 }
  0xb0   : > { %5118 = dma.done.wait (%p5644_p1), %s289_s6, 256  }
  0xb1   : > { %5120 = vsyncadd (%p5644_p1), %s289_s6, 4294967040  ;;  %s297_s29 = sand.u32 1, %s5235_s24   ;;  %s5444_s2 = scalar_lea.vmem [#allocation5], %s3656_s4 }
  0xb2   : > { %s298_s28 = scalar_lea.sflag [#allocation6], %s297_s29 }
  0xb3   : > { %5122 = dma.done.wait (%p5644_p1), %s298_s28, 256  }
  0xb4   : > { %5124 = vsyncadd (%p5644_p1), %s298_s28, 4294967040  ;;  %p5645_p8 = scmp.eq.s32.totalorder %s5235_s24, 0 }
  0xb6   : > { %5126 = dma.done.wait (%p5645_p8), [#allocation6], 128   ;;  %p5646_p3 = pmov %p5645_p8 }
  0xb8   : > { %5128 = vsyncadd (%p5646_p3), [#allocation6], 4294967168  ;;  %p5647_p11 = pmov %p5646_p3 }
  0xb9   : > { %p5648_p0 = pmov %p5646_p3 }
  0xba   : > { %5130 = dma.done.wait (%p5647_p11), [#allocation9], 55296  }
  0xbb   : > { %5132 = vsyncadd (%p5648_p0), [#allocation9], 4294912000  ;;  %v4332_v0 = vld [vmem:[#allocation8 + $0x304] ss:$24 sps:$4 sm:$0xff]   ;;  %v4336_v2 = vld [vmem:[#allocation8 + $0x300] ss:$24 sps:$4 sm:$0xff]   ;;  %v352_v37 = vlaneseq }
  0xbc   : > { %v4334_v1 = vld [vmem:[#allocation8 + $0x4] ss:$24 sps:$4 sm:$0xff]   ;;  %1072 = vmatprep.subr.bf16.mxu1 %v4332_v0  ;;  %v4337_v3 = vld [vmem:[#allocation8] ss:$24 sps:$4 sm:$0xff]   ;;  %v4338_v4 = vld [vmem:[#allocation8 + $0x334] ss:$24 sps:$4 sm:$0xff]  }
  0xbd   : > { %1675 = vmatprep.subr.bf16.mxu0 %v4334_v1  ;;  %1073 = vmatpush1.bf16.msra.mxu1 %v4336_v2  ;;  %v4340_v5 = vld [vmem:[#allocation8 + $0x34] ss:$24 sps:$4 sm:$0xff]   ;;  %v4342_v6 = vld [vmem:[#allocation8 + $0x330] ss:$24 sps:$4 sm:$0xff]   ;;  %v4344_v8 = vld [vmem:[#allocation8 + $0x364] ss:$24 sps:$4 sm:$0xff]  }
  0xbe   : > { %1676 = vmatpush1.bf16.msra.mxu0 %v4337_v3  ;;  %1074 = vmatprep.subr.bf16.mxu1 %v4338_v4  ;;  %v4343_v7 = vld [vmem:[#allocation8 + $0x30] ss:$24 sps:$4 sm:$0xff]   ;;  %v4346_v9 = vld [vmem:[#allocation8 + $0x64] ss:$24 sps:$4 sm:$0xff]   ;;  %v4348_v10 = vld [vmem:[#allocation8 + $0x360] ss:$24 sps:$4 sm:$0xff]  }
  0xbf   : > { %1677 = vmatprep.subr.bf16.mxu0 %v4340_v5  ;;  %v4349_v11 = vld [vmem:[#allocation8 + $0x60] ss:$24 sps:$4 sm:$0xff]   ;;  %v4350_v12 = vld [vmem:[#allocation8 + $0x394] ss:$24 sps:$4 sm:$0xff]   ;;  %v4354_v14 = vld [vmem:[#allocation8 + $0x390] ss:$24 sps:$4 sm:$0xff]  }
  0xc0   : > { %v4352_v13 = vld [vmem:[#allocation8 + $0x94] ss:$24 sps:$4 sm:$0xff]   ;;  %v4355_v15 = vld [vmem:[#allocation8 + $0x90] ss:$24 sps:$4 sm:$0xff]   ;;  %v4356_v16 = vld [vmem:[#allocation8 + $0x3c4] ss:$24 sps:$4 sm:$0xff]  }
  0xc1   : > { %1075 = vmatpush1.bf16.msra.mxu1 %v4342_v6  ;;  %v4358_v17 = vld [vmem:[#allocation8 + $0xc4] ss:$24 sps:$4 sm:$0xff]   ;;  %v4360_v18 = vld [vmem:[#allocation8 + $0x3c0] ss:$24 sps:$4 sm:$0xff]   ;;  %v4362_v20 = vld [vmem:[#allocation8 + $0x3f4] ss:$24 sps:$4 sm:$0xff]  }
  0xc2   : > { %1678 = vmatpush1.bf16.msra.mxu0 %v4343_v7  ;;  %1076 = vmatprep.subr.bf16.mxu1 %v4344_v8  ;;  %v4361_v19 = vld [vmem:[#allocation8 + $0xc0] ss:$24 sps:$4 sm:$0xff]   ;;  %v4364_v21 = vld [vmem:[#allocation8 + $0xf4] ss:$24 sps:$4 sm:$0xff]   ;;  %v4366_v22 = vld [vmem:[#allocation8 + $0x3f0] ss:$24 sps:$4 sm:$0xff]  }
  0xc3   : > { %1679 = vmatprep.subr.bf16.mxu0 %v4346_v9  ;;  %v4367_v23 = vld [vmem:[#allocation8 + $0xf0] ss:$24 sps:$4 sm:$0xff]   ;;  %v4368_v24 = vld [vmem:[#allocation8 + $0x424] ss:$24 sps:$4 sm:$0xff]   ;;  %v4372_v26 = vld [vmem:[#allocation8 + $0x420] ss:$24 sps:$4 sm:$0xff]  }
  0xc4   : > { %v4370_v25 = vld [vmem:[#allocation8 + $0x124] ss:$24 sps:$4 sm:$0xff]   ;;  %v4373_v27 = vld [vmem:[#allocation8 + $0x120] ss:$24 sps:$4 sm:$0xff]   ;;  %v4374_v28 = vld [vmem:[#allocation8 + $0x454] ss:$24 sps:$4 sm:$0xff]  }
  0xc5   : > { %1077 = vmatpush1.bf16.msra.mxu1 %v4348_v10  ;;  %v4376_v29 = vld [vmem:[#allocation8 + $0x154] ss:$24 sps:$4 sm:$0xff]   ;;  %v4378_v30 = vld [vmem:[#allocation8 + $0x450] ss:$24 sps:$4 sm:$0xff]   ;;  %v4380_v32 = vld [vmem:[#allocation8 + $0x484] ss:$24 sps:$4 sm:$0xff]  }
  0xc6   : > { %1680 = vmatpush1.bf16.msra.mxu0 %v4349_v11  ;;  %1078 = vmatprep.subr.bf16.mxu1 %v4350_v12  ;;  %v4379_v31 = vld [vmem:[#allocation8 + $0x150] ss:$24 sps:$4 sm:$0xff]   ;;  %v4382_v33 = vld [vmem:[#allocation8 + $0x184] ss:$24 sps:$4 sm:$0xff]   ;;  %v4384_v34 = vld [vmem:[#allocation8 + $0x480] ss:$24 sps:$4 sm:$0xff]  }
  0xc7   : > { %1681 = vmatprep.subr.bf16.mxu0 %v4352_v13  ;;  %v4385_v35 = vld [vmem:[#allocation8 + $0x180] ss:$24 sps:$4 sm:$0xff]   ;;  %v4386_v36 = vld [vmem:[#allocation8 + $0x4b4] ss:$24 sps:$4 sm:$0xff]   ;;  %v4390_v39 = vld [vmem:[#allocation8 + $0x4b0] ss:$24 sps:$4 sm:$0xff]  }
  0xc8   : > { %v4388_v38 = vld [vmem:[#allocation8 + $0x1b4] ss:$24 sps:$4 sm:$0xff]   ;;  %v4391_v40 = vld [vmem:[#allocation8 + $0x1b0] ss:$24 sps:$4 sm:$0xff]   ;;  %v4392_v41 = vld [vmem:[#allocation8 + $0x4e4] ss:$24 sps:$4 sm:$0xff]  }
  0xc9   : > { %1079 = vmatpush1.bf16.msra.mxu1 %v4354_v14  ;;  %v353_v42 = vshrl.u32 %v352_v37, 7  ;;  %v4394_v43 = vld [vmem:[#allocation8 + $0x1e4] ss:$24 sps:$4 sm:$0xff]   ;;  %v4396_v44 = vld [vmem:[#allocation8 + $0x4e0] ss:$24 sps:$4 sm:$0xff]   ;;  %vm5171_vm0 = vmmov 0  }
  0xca   : > { %1682 = vmatpush1.bf16.msra.mxu0 %v4355_v15  ;;  %1080 = vmatprep.subr.bf16.mxu1 %v4356_v16  ;;  %v4397_v45 = vld [vmem:[#allocation8 + $0x1e0] ss:$24 sps:$4 sm:$0xff]   ;;  %v4398_v46 = vld [vmem:[#allocation8 + $0x514] ss:$24 sps:$4 sm:$0xff]   ;;  %v4402_v50 = vld [vmem:[#allocation8 + $0x510] ss:$24 sps:$4 sm:$0xff]  }
  0xcb   : > { %1683 = vmatprep.subr.bf16.mxu0 %v4358_v17  ;;  %v5458_v47 = vsub.s32 1, %v353_v42  ;;  %v5460_v48 = vsub.s32 0, %v353_v42  ;;  %v4400_v49 = vld [vmem:[#allocation8 + $0x214] ss:$24 sps:$4 sm:$0xff]   ;;  %v4403_v51 = vld [vmem:[#allocation8 + $0x210] ss:$24 sps:$4 sm:$0xff]  }
  0xcc   : > { %v5463_v52 = vld [vmem:[%s5437_s8 + $0x8] sm:$0xff]  ;;  %v462_v54 = vld [vmem:[#allocation7 + $0x2] sm:$0x3]  ;;  %v350_v61 = vld [vmem:[#allocation7] sm:$0x3]  ;;  %s3661_s24 = sshll.u32 %s5433_s12, 3 }
  0xcd   : > { %1081 = vmatpush1.bf16.msra.mxu1 %v4360_v18  ;;  %v5466_v53 = vld [vmem:[%s5444_s2 + $0x8] sm:$0xff]  ;;  %v346_v55 = vld [vmem:[%s5437_s8] sm:$0xff]  ;;  %v471_v56 = vrot.slane %v462_v54, %v5458_v47  ;;  %v467_v58 = vrot.slane %v462_v54, %v5460_v48  ;;  %v359_v2 = vrot.slane %v350_v61, %v5458_v47  ;;  %s4047_s26 = sshll.u32 %s5151_s21, 7  ;;  %s344_s11 = scalar_lea.vmem [#allocation11], %s3661_s24 }
  0xce   : > { %1684 = vmatpush1.bf16.msra.mxu0 %v4361_v19  ;;  %1082 = vmatprep.subr.bf16.mxu1 %v4362_v20  ;;  %v348_v57 = vld [vmem:[%s5444_s2] sm:$0xff]  ;;  %s3505_s7 = sshll.u32 %s344_s11, 4  ;;  %s5568_s16 = scalar_lea.hbm %s5622_s5, %s4047_s26  ;;  %s5570_s7 = int_to_ptr.vmem [resolvable:$true] %s3505_s7 }
  0xcf   : > { %1685 = vmatprep.subr.bf16.mxu0 %v4364_v21  ;;  %v4404_v59 = vld [vmem:[#allocation8 + $0x544] ss:$24 sps:$4 sm:$0xff]   ;;  %v475_v62 = vmul.f32 %v471_v56, %v5463_v52  ;;  %v477_v63 = vmul.f32 %v471_v56, %v5466_v53  ;;  %v474_v0 = vmul.f32 %v467_v58, %v346_v55  ;;  %v476_v1 = vmul.f32 %v467_v58, %v348_v57  ;;  %v4408_v3 = vld [vmem:[#allocation8 + $0x540] ss:$24 sps:$4 sm:$0xff]   ;;  %v4410_v6 = vld [vmem:[#allocation8 + $0x574] ss:$24 sps:$4 sm:$0xff]  }
  0xd0   : > { %v4406_v60 = vld [vmem:[#allocation8 + $0x244] ss:$24 sps:$4 sm:$0xff]   ;;  %v4409_v4 = vld [vmem:[#allocation8 + $0x240] ss:$24 sps:$4 sm:$0xff]   ;;  %v4412_v7 = vld [vmem:[#allocation8 + $0x274] ss:$24 sps:$4 sm:$0xff]   ;;  %v363_v8 = vmul.f32 %v359_v2, %v5463_v52  ;;  %v355_v21 = vrot.slane %v350_v61, %v5460_v48 }
  0xd1   : > { %1083 = vmatpush1.bf16.msra.mxu1 %v4366_v22  ;;  %v479_v5 = vpack.c.bf16 %v477_v63, %v475_v62  ;;  %v4414_v11 = vld [vmem:[#allocation8 + $0x570] ss:$24 sps:$4 sm:$0xff]   ;;  %v478_v12 = vpack.c.bf16 %v476_v1, %v474_v0  ;;  %v4416_v16 = vld [vmem:[#allocation8 + $0x5a4] ss:$24 sps:$4 sm:$0xff]   ;;  %v4420_v19 = vld [vmem:[#allocation8 + $0x5a0] ss:$24 sps:$4 sm:$0xff]  }
  0xd2   : > { %1686 = vmatpush1.bf16.msra.mxu0 %v4367_v23  ;;  %1084 = vmatprep.subr.bf16.mxu1 %v4368_v24  ;;  %v5476_v13 = vpack.c.bf16 %v363_v8, %v363_v8  ;;  %v4415_v14 = vld [vmem:[#allocation8 + $0x270] ss:$24 sps:$4 sm:$0xff]   ;;  %v4418_v17 = vld [vmem:[#allocation8 + $0x2a4] ss:$24 sps:$4 sm:$0xff]   ;;  %v4421_v22 = vld [vmem:[#allocation8 + $0x2a0] ss:$24 sps:$4 sm:$0xff]  }
  0xd3   : > { %1687 = vmatprep.subr.bf16.mxu0 %v4370_v25  ;;  %v584_v9 = vshrl.u32 %v479_v5, 16  ;;  %v586_v10 = vshll.u32 %v479_v5, 16  ;;  %v579_v20 = vshll.u32 %v478_v12, 16  ;;  %v4422_v23 = vld [vmem:[#allocation8 + $0x5d4] ss:$24 sps:$4 sm:$0xff]   ;;  %s3491_s30 = scalar_lea.sflag [#allocation4], %s5433_s12 }
  0xd4   : > { %1707 = vmatprep.mubr.bf16.mxu0 %v5476_v13  ;;  %v4424_v24 = vld [vmem:[#allocation8 + $0x2d4] ss:$24 sps:$4 sm:$0xff]   ;;  %v4426_v25 = vld [vmem:[#allocation8 + $0x5d0] ss:$24 sps:$4 sm:$0xff]   ;;  %v4439_v37 = vld [vmem:[#allocation8 + $0x44] ss:$24 sps:$4 sm:$0xff]  }
  0xd5   : > { %1085 = vmatpush1.bf16.msra.mxu1 %v4372_v26  ;;  %v588_v15 = vrot.slane %v586_v10, 1  ;;  %v577_v26 = vshrl.u32 %v478_v12, 16  ;;  %v4440_v42 = vld [vmem:[#allocation8 + $0x368] ss:$24 sps:$4 sm:$0xff]   ;;  %v4460_v56 = vld [vmem:[#allocation8 + $0x3fc] ss:$24 sps:$4 sm:$0xff]  }
  0xd6   : > { %1688 = vmatpush1.bf16.msra.mxu0 %v4373_v27  ;;  %1086 = vmatprep.subr.bf16.mxu1 %v4374_v28  ;;  %v581_v27 = vrot.slane %v579_v20, 1  ;;  %v362_v28 = vmul.f32 %v355_v21, %v346_v55  ;;  %v4452_v54 = vld [vmem:[#allocation8 + $0x3c8] ss:$24 sps:$4 sm:$0xff]   ;;  %v4463_v57 = vld [vmem:[#allocation8 + $0x104] ss:$24 sps:$4 sm:$0xff]   ;;  %s5065_s10 = scalar_lea.vmem %s5570_s7, 128 }
  0xd7   : > { %1689 = vmatprep.subr.bf16.mxu0 %v4376_v29  ;;  %v5478_v18 = vor.u32 %v588_v15, %v584_v9  ;;  %v4427_v29 = vld [vmem:[#allocation8 + $0x2d0] ss:$24 sps:$4 sm:$0xff]   ;;  %v4469_v61 = vld [vmem:[#allocation8 + $0x134] ss:$24 sps:$4 sm:$0xff]   ;;  %v4475_v1 = vld [vmem:[#allocation8 + $0x164] ss:$24 sps:$4 sm:$0xff]   ;;  %p5066_p5 = scmp.ne.s32.totalorder %s5570_s7, %s5065_s10 }
  0xd8   : > { %v4455_v55 = vld [vmem:[#allocation8 + $0xd0] ss:$24 sps:$4 sm:$0xff]   ;;  %v4472_v0 = vld [vmem:[#allocation8 + $0x45c] ss:$24 sps:$4 sm:$0xff]   ;;  %v4490_v12 = vld [vmem:[#allocation8 + $0x4ec] ss:$24 sps:$4 sm:$0xff]  }
  0xd9   : > { %1087 = vmatpush1.bf16.msra.mxu1 %v4378_v30  ;;  %1104 = vmatprep.mubr.bf16.mxu1 %v5478_v18  ;;  %v4430_v30 = vld [vmem:[#allocation8 + $0x30c] ss:$24 sps:$4 sm:$0xff]   ;;  %v4458_v58 = vld [vmem:[#allocation8 + $0x3f8] ss:$24 sps:$4 sm:$0xff]   ;;  %v4464_v62 = vld [vmem:[#allocation8 + $0x428] ss:$24 sps:$4 sm:$0xff]  }
  0xda   : > { %1690 = vmatpush1.bf16.msra.mxu0 %v4379_v31  ;;  %1088 = vmatprep.subr.bf16.mxu1 %v4380_v32  ;;  %v4433_v31 = vld [vmem:[#allocation8 + $0x14] ss:$24 sps:$4 sm:$0xff]   ;;  %v5483_v32 = vor.u32 %v581_v27, %v577_v26  ;;  %v4467_v63 = vld [vmem:[#allocation8 + $0x130] ss:$24 sps:$4 sm:$0xff]   ;;  %v4487_v9 = vld [vmem:[#allocation8 + $0x1c4] ss:$24 sps:$4 sm:$0xff]  }
  0xdb   : > { %1691 = vmatprep.subr.bf16.mxu0 %v4382_v33  ;;  %v4428_v33 = vld [vmem:[#allocation8 + $0x308] ss:$24 sps:$4 sm:$0xff]   ;;  %v4470_v2 = vld [vmem:[#allocation8 + $0x458] ss:$24 sps:$4 sm:$0xff]   ;;  %v4481_v5 = vld [vmem:[#allocation8 + $0x194] ss:$24 sps:$4 sm:$0xff]  }
  0xdc   : > { %v4484_v8 = vld [vmem:[#allocation8 + $0x4bc] ss:$24 sps:$4 sm:$0xff]   ;;  %v4482_v10 = vld [vmem:[#allocation8 + $0x4b8] ss:$24 sps:$4 sm:$0xff]   ;;  %v4488_v15 = vld [vmem:[#allocation8 + $0x4e8] ss:$24 sps:$4 sm:$0xff]  }
  0xdd   : > { %1089 = vmatpush1.bf16.msra.mxu1 %v4384_v34  ;;  %v5485_v34 = vpack.c.bf16 %v362_v28, %v362_v28  ;;  %v4494_v20 = vld [vmem:[#allocation8 + $0x518] ss:$24 sps:$4 sm:$0xff]   ;;  %v4508_v26 = vld [vmem:[#allocation8 + $0x57c] ss:$24 sps:$4 sm:$0xff]   ;;  %p5649_p10 = scmp.ne.s32.totalorder %s5640_s13, 0  ;;  %s5173_s21 = smov [#allocation11]  }
  0xde   : > { %1692 = vmatpush1.bf16.msra.mxu0 %v4385_v35  ;;  %1090 = vmatprep.subr.bf16.mxu1 %v4386_v36  ;;  %v4431_v35 = vld [vmem:[#allocation8 + $0x10] ss:$24 sps:$4 sm:$0xff]   ;;  %v4436_v36 = vld [vmem:[#allocation8 + $0x33c] ss:$24 sps:$4 sm:$0xff]   ;;  %v4497_v21 = vld [vmem:[#allocation8 + $0x220] ss:$24 sps:$4 sm:$0xff]  }
  0xdf   : > { %1693 = vmatprep.subr.bf16.mxu0 %v4388_v38  ;;  %v4434_v38 = vld [vmem:[#allocation8 + $0x338] ss:$24 sps:$4 sm:$0xff]   ;;  %v4511_v27 = vld [vmem:[#allocation8 + $0x284] ss:$24 sps:$4 sm:$0xff]   ;;  %p5067_p13 = pnand %p5066_p5, %p5649_p10  ;;  %s5069_s14 = sshll.u32 %s5173_s21, 4  ;;  %s5070_s14 = int_to_ptr.vmem [resolvable:$false] %s5069_s14 }
  0xe0   : > { %v4506_v28 = vld [vmem:[#allocation8 + $0x578] ss:$24 sps:$4 sm:$0xff]   ;;  %s5071_s25 = scalar_lea.vmem %s5070_s14, 256  ;;  %p5072_p7 = scmp.lt.s32.totalorder %s5570_s7, %s5070_s14 }
  0xe1   : > { %1091 = vmatpush1.bf16.msra.mxu1 %v4390_v39  ;;  %v4437_v39 = vld [vmem:[#allocation8 + $0x40] ss:$24 sps:$4 sm:$0xff]   ;;  %p5068_p9 = pneg %p5067_p13  ;;  %p5073_p12 = scmp.lt.s32.totalorder %s5071_s25, %s5065_s10 }
  0xe2   : > { %1694 = vmatpush1.bf16.msra.mxu0 %v4391_v40  ;;  %1092 = vmatprep.subr.bf16.mxu1 %v4392_v41  ;;  %v4442_v40 = vld [vmem:[#allocation8 + $0x36c] ss:$24 sps:$4 sm:$0xff]  }
  0xe3   : > { %1695 = vmatprep.subr.bf16.mxu0 %v4394_v43  ;;  %v4445_v41 = vld [vmem:[#allocation8 + $0x74] ss:$24 sps:$4 sm:$0xff]   ;;  %v4443_v43 = vld [vmem:[#allocation8 + $0x70] ss:$24 sps:$4 sm:$0xff]   ;;  %p5074_p4 = por %p5073_p12, %p5072_p7 }
  0xe5   : > { %1093 = vmatpush1.bf16.msra.mxu1 %v4396_v44  ;;  %v4448_v44 = vld [vmem:[#allocation8 + $0x39c] ss:$24 sps:$4 sm:$0xff]   ;;  %p5075_p6 = pnand %p5074_p4, %p5068_p9 }
  0xe6   : > { %1696 = vmatpush1.bf16.msra.mxu0 %v4397_v45  ;;  %1094 = vmatprep.subr.bf16.mxu1 %v4398_v46  ;;  %v4451_v45 = vld [vmem:[#allocation8 + $0xa4] ss:$24 sps:$4 sm:$0xff]   ;;  %v4446_v46 = vld [vmem:[#allocation8 + $0x398] ss:$24 sps:$4 sm:$0xff]  }
  0xe7   : > { %1697 = vmatprep.subr.bf16.mxu0 %v4400_v49  ;;  %v4449_v49 = vld [vmem:[#allocation8 + $0xa0] ss:$24 sps:$4 sm:$0xff]  }
  0xe9   : > { %1095 = vmatpush1.bf16.msra.mxu1 %v4402_v50  ;;  %v4454_v50 = vld [vmem:[#allocation8 + $0x3cc] ss:$24 sps:$4 sm:$0xff]  }
  0xea   : > { %1698 = vmatpush1.bf16.msra.mxu0 %v4403_v51  ;;  %1096 = vmatprep.subr.bf16.mxu1 %v4404_v59  ;;  %v4457_v51 = vld [vmem:[#allocation8 + $0xd4] ss:$24 sps:$4 sm:$0xff]   ;;  %v4461_v59 = vld [vmem:[#allocation8 + $0x100] ss:$24 sps:$4 sm:$0xff]  }
  0xeb   : > { %1699 = vmatprep.subr.bf16.mxu0 %v4406_v60  ;;  %v4466_v60 = vld [vmem:[#allocation8 + $0x42c] ss:$24 sps:$4 sm:$0xff]  }
  0xed   : > { %1097 = vmatpush1.bf16.msra.mxu1 %v4408_v3  ;;  %v4473_v3 = vld [vmem:[#allocation8 + $0x160] ss:$24 sps:$4 sm:$0xff]  }
  0xee   : > { %1700 = vmatpush1.bf16.msra.mxu0 %v4409_v4  ;;  %1098 = vmatprep.subr.bf16.mxu1 %v4410_v6  ;;  %v4478_v4 = vld [vmem:[#allocation8 + $0x48c] ss:$24 sps:$4 sm:$0xff]   ;;  %v4476_v6 = vld [vmem:[#allocation8 + $0x488] ss:$24 sps:$4 sm:$0xff]  }
  0xef   : > { %1701 = vmatprep.subr.bf16.mxu0 %v4412_v7  ;;  %v4479_v7 = vld [vmem:[#allocation8 + $0x190] ss:$24 sps:$4 sm:$0xff]  }
  0xf1   : > { %1099 = vmatpush1.bf16.msra.mxu1 %v4414_v11  ;;  %v4485_v11 = vld [vmem:[#allocation8 + $0x1c0] ss:$24 sps:$4 sm:$0xff]  }
  0xf2   : > { %1702 = vmatpush1.bf16.msra.mxu0 %v4415_v14  ;;  %1100 = vmatprep.subr.bf16.mxu1 %v4416_v16  ;;  %v4493_v14 = vld [vmem:[#allocation8 + $0x1f4] ss:$24 sps:$4 sm:$0xff]   ;;  %v4491_v16 = vld [vmem:[#allocation8 + $0x1f0] ss:$24 sps:$4 sm:$0xff]  }
  0xf3   : > { %1703 = vmatprep.subr.bf16.mxu0 %v4418_v17  ;;  %v4496_v17 = vld [vmem:[#allocation8 + $0x51c] ss:$24 sps:$4 sm:$0xff]  }
  0xf5   : > { %1101 = vmatpush1.bf16.msra.mxu1 %v4420_v19  ;;  %v4499_v19 = vld [vmem:[#allocation8 + $0x224] ss:$24 sps:$4 sm:$0xff]  }
  0xf6   : > { %1704 = vmatpush1.bf16.msra.mxu0 %v4421_v22  ;;  %1102 = vmatprep.subr.bf16.mxu1 %v4422_v23  ;;  %v4502_v22 = vld [vmem:[#allocation8 + $0x54c] ss:$24 sps:$4 sm:$0xff]  }
  0xf7   : > { %1705 = vmatprep.subr.bf16.mxu0 %v4424_v24  ;;  %v4505_v23 = vld [vmem:[#allocation8 + $0x254] ss:$24 sps:$4 sm:$0xff]   ;;  %v4500_v24 = vld [vmem:[#allocation8 + $0x548] ss:$24 sps:$4 sm:$0xff]  }
  0xf9   : > { %1103 = vmatpush1.bf16.msra.mxu1 %v4426_v25  ;;  %v4503_v25 = vld [vmem:[#allocation8 + $0x250] ss:$24 sps:$4 sm:$0xff]  }
  0xfa   : > { %1706 = vmatpush1.bf16.msra.mxu0 %v4427_v29  ;;  %1113 = vmatprep.subr.bf16.mxu1 %v4430_v30  ;;  %v4509_v29 = vld [vmem:[#allocation8 + $0x280] ss:$24 sps:$4 sm:$0xff]   ;;  %v4514_v30 = vld [vmem:[#allocation8 + $0x5ac] ss:$24 sps:$4 sm:$0xff]  }
  0xfb   : > { %1757 = vmatprep.subr.bf16.mxu0 %v4433_v31  ;;  %v4517_v31 = vld [vmem:[#allocation8 + $0x2b4] ss:$24 sps:$4 sm:$0xff]  }
  0xfc   : > { %1105 = vmatmul.mubr.bf16.vlgmr.msra.gmra.mrb[0].mxu1 %v5483_v32 }
  0xfd   : > { %1708 = vmatmul.mubr.bf16.vlgmr.msra.gmra.mrb[0].mxu0 %v5485_v34  ;;  %1114 = vmatpush1.bf16.msra.mxu1 %v4428_v33  ;;  %v4512_v33 = vld [vmem:[#allocation8 + $0x5a8] ss:$24 sps:$4 sm:$0xff]  }
  0xfe   : > { %1758 = vmatpush1.bf16.msra.mxu0 %v4431_v35  ;;  %1115 = vmatprep.subr.bf16.mxu1 %v4436_v36  ;;  %v4515_v35 = vld [vmem:[#allocation8 + $0x2b0] ss:$24 sps:$4 sm:$0xff]   ;;  %v4520_v36 = vld [vmem:[#allocation8 + $0x5dc] ss:$24 sps:$4 sm:$0xff]  }
  0xff   : > { %1759 = vmatprep.subr.bf16.mxu0 %v4439_v37  ;;  %1145 = vmatprep.mubr.bf16.mxu1 %v5478_v18  ;;  %v4523_v37 = vld [vmem:[#allocation8 + $0x2e4] ss:$24 sps:$4 sm:$0xff]  }
 0x100   : > { %1789 = vmatprep.mubr.bf16.mxu0 %v5476_v13 }
 0x101   : > { %1116 = vmatpush1.bf16.msra.mxu1 %v4434_v38  ;;  %v4518_v38 = vld [vmem:[#allocation8 + $0x5d8] ss:$24 sps:$4 sm:$0xff]  }
 0x102   : > { %1760 = vmatpush1.bf16.msra.mxu0 %v4437_v39  ;;  %1117 = vmatprep.subr.bf16.mxu1 %v4442_v40  ;;  %v4521_v39 = vld [vmem:[#allocation8 + $0x2e0] ss:$24 sps:$4 sm:$0xff]   ;;  %v4526_v40 = vld [vmem:[#allocation8 + $0x314] ss:$24 sps:$4 sm:$0xff]  }
 0x103   : > { %1761 = vmatprep.subr.bf16.mxu0 %v4445_v41  ;;  %v4529_v41 = vld [vmem:[#allocation8 + $0x604] ss:$24 sps:$4 sm:$0xff]  }
 0x105   : > { %1118 = vmatpush1.bf16.msra.mxu1 %v4440_v42  ;;  %v4524_v42 = vld [vmem:[#allocation8 + $0x310] ss:$24 sps:$4 sm:$0xff]  }
 0x106   : > { %1762 = vmatpush1.bf16.msra.mxu0 %v4443_v43  ;;  %1119 = vmatprep.subr.bf16.mxu1 %v4448_v44  ;;  %v4527_v43 = vld [vmem:[#allocation8 + $0x600] ss:$24 sps:$4 sm:$0xff]   ;;  %v4532_v44 = vld [vmem:[#allocation8 + $0x344] ss:$24 sps:$4 sm:$0xff]  }
 0x107   : > { %1763 = vmatprep.subr.bf16.mxu0 %v4451_v45  ;;  %v4535_v45 = vld [vmem:[#allocation8 + $0x634] ss:$24 sps:$4 sm:$0xff]  }
 0x109   : > { %1120 = vmatpush1.bf16.msra.mxu1 %v4446_v46  ;;  %v4530_v46 = vld [vmem:[#allocation8 + $0x340] ss:$24 sps:$4 sm:$0xff]  }
 0x10a   : > { %1764 = vmatpush1.bf16.msra.mxu0 %v4449_v49  ;;  %1121 = vmatprep.subr.bf16.mxu1 %v4454_v50  ;;  %v4533_v49 = vld [vmem:[#allocation8 + $0x630] ss:$24 sps:$4 sm:$0xff]   ;;  %v5493_v50 = vld [vmem:[#allocation7 + $0x4] sm:$0x3] }
 0x10b   : > { %1765 = vmatprep.subr.bf16.mxu0 %v4457_v51  ;;  %v4538_v51 = vld [vmem:[#allocation8 + $0x374] ss:$24 sps:$4 sm:$0xff]  }
 0x10d   : > { %1122 = vmatpush1.bf16.msra.mxu1 %v4452_v54  ;;  %v1807_v54 = vrot.slane %v5493_v50, %v5458_v47 }
 0x10e   : > { %1766 = vmatpush1.bf16.msra.mxu0 %v4455_v55  ;;  %1123 = vmatprep.subr.bf16.mxu1 %v4460_v56  ;;  %v4541_v55 = vld [vmem:[#allocation8 + $0x664] ss:$24 sps:$4 sm:$0xff]  }
 0x10f   : > { %1767 = vmatprep.subr.bf16.mxu0 %v4463_v57  ;;  %v1811_v56 = vmul.f32 %v1807_v54, %v5463_v52  ;;  %v1813_v57 = vmul.f32 %v1807_v54, %v5466_v53  ;;  %v4550_v52 = vld [vmem:[#allocation8 + $0x3d4] ss:$24 sps:$4 sm:$0xff]   ;;  %v4548_v53 = vld [vmem:[#allocation8 + $0x3d0] ss:$24 sps:$4 sm:$0xff]  }
 0x110   : > { %v5510_v54 = vld [vmem:[%s5444_s2] sm:$0xff] }
 0x111   : > { %1124 = vmatpush1.bf16.msra.mxu1 %v4458_v58  ;;  %v4536_v58 = vld [vmem:[#allocation8 + $0x370] ss:$24 sps:$4 sm:$0xff]  }
 0x112   : > { %1768 = vmatpush1.bf16.msra.mxu0 %v4461_v59  ;;  %1125 = vmatprep.subr.bf16.mxu1 %v4466_v60  ;;  %v4539_v59 = vld [vmem:[#allocation8 + $0x660] ss:$24 sps:$4 sm:$0xff]   ;;  %v4544_v60 = vld [vmem:[#allocation8 + $0x3a4] ss:$24 sps:$4 sm:$0xff]  }
 0x113   : > { %1769 = vmatprep.subr.bf16.mxu0 %v4469_v61  ;;  %v1815_v61 = vpack.c.bf16 %v1813_v57, %v1811_v56  ;;  %v4611_v56 = vld [vmem:[#allocation8 + $0x8a0] ss:$24 sps:$4 sm:$0xff]   ;;  %v4619_v57 = vld [vmem:[#allocation8 + $0x8d4] ss:$24 sps:$4 sm:$0xff]  }
 0x115   : > { %1126 = vmatpush1.bf16.msra.mxu1 %v4464_v62  ;;  %v4547_v62 = vld [vmem:[#allocation8 + $0x694] ss:$24 sps:$4 sm:$0xff]  }
 0x116   : > { %1770 = vmatpush1.bf16.msra.mxu0 %v4467_v63  ;;  %1127 = vmatprep.subr.bf16.mxu1 %v4472_v0  ;;  %v5500_v63 = vrot.slane %v1815_v61, 1  ;;  %v4542_v0 = vld [vmem:[#allocation8 + $0x3a0] ss:$24 sps:$4 sm:$0xff]   ;;  %v4622_v61 = vld [vmem:[#allocation8 + $0xc] ss:$24 sps:$4 sm:$0xff]  }
 0x117   : > { %1771 = vmatprep.subr.bf16.mxu0 %v4475_v1  ;;  %v4545_v1 = vld [vmem:[#allocation8 + $0x690] ss:$24 sps:$4 sm:$0xff]  }
 0x119   : > { %1128 = vmatpush1.bf16.msra.mxu1 %v4470_v2  ;;  %v4551_v2 = vld [vmem:[#allocation8 + $0x6c0] ss:$24 sps:$4 sm:$0xff]  }
 0x11a   : > { %1772 = vmatpush1.bf16.msra.mxu0 %v4473_v3  ;;  %1129 = vmatprep.subr.bf16.mxu1 %v4478_v4  ;;  %v4556_v3 = vld [vmem:[#allocation8 + $0x404] ss:$24 sps:$4 sm:$0xff]   ;;  %v4559_v4 = vld [vmem:[#allocation8 + $0x6f4] ss:$24 sps:$4 sm:$0xff]  }
 0x11b   : > { %1773 = vmatprep.subr.bf16.mxu0 %v4481_v5  ;;  %v4554_v5 = vld [vmem:[#allocation8 + $0x400] ss:$24 sps:$4 sm:$0xff]  }
 0x11d   : > { %1130 = vmatpush1.bf16.msra.mxu1 %v4476_v6  ;;  %v4557_v6 = vld [vmem:[#allocation8 + $0x6f0] ss:$24 sps:$4 sm:$0xff]  }
 0x11e   : > { %1774 = vmatpush1.bf16.msra.mxu0 %v4479_v7  ;;  %1131 = vmatprep.subr.bf16.mxu1 %v4484_v8  ;;  %v4562_v7 = vld [vmem:[#allocation8 + $0x434] ss:$24 sps:$4 sm:$0xff]   ;;  %v4565_v8 = vld [vmem:[#allocation8 + $0x724] ss:$24 sps:$4 sm:$0xff]  }
 0x11f   : > { %1775 = vmatprep.subr.bf16.mxu0 %v4487_v9  ;;  %v4560_v9 = vld [vmem:[#allocation8 + $0x430] ss:$24 sps:$4 sm:$0xff]  }
 0x121   : > { %1132 = vmatpush1.bf16.msra.mxu1 %v4482_v10  ;;  %v4563_v10 = vld [vmem:[#allocation8 + $0x720] ss:$24 sps:$4 sm:$0xff]  }
 0x122   : > { %1776 = vmatpush1.bf16.msra.mxu0 %v4485_v11  ;;  %1133 = vmatprep.subr.bf16.mxu1 %v4490_v12  ;;  %v4568_v11 = vld [vmem:[#allocation8 + $0x464] ss:$24 sps:$4 sm:$0xff]   ;;  %v4571_v12 = vld [vmem:[#allocation8 + $0x754] ss:$24 sps:$4 sm:$0xff]  }
 0x123   : > { %1777 = vmatprep.subr.bf16.mxu0 %v4493_v14  ;;  %v4566_v14 = vld [vmem:[#allocation8 + $0x460] ss:$24 sps:$4 sm:$0xff]  }
 0x125   : > { %1134 = vmatpush1.bf16.msra.mxu1 %v4488_v15  ;;  %v4569_v15 = vld [vmem:[#allocation8 + $0x750] ss:$24 sps:$4 sm:$0xff]  }
 0x126   : > { %1778 = vmatpush1.bf16.msra.mxu0 %v4491_v16  ;;  %1135 = vmatprep.subr.bf16.mxu1 %v4496_v17  ;;  %v4574_v16 = vld [vmem:[#allocation8 + $0x494] ss:$24 sps:$4 sm:$0xff]   ;;  %v4577_v17 = vld [vmem:[#allocation8 + $0x784] ss:$24 sps:$4 sm:$0xff]  }
 0x127   : > { %1779 = vmatprep.subr.bf16.mxu0 %v4499_v19  ;;  %v4572_v19 = vld [vmem:[#allocation8 + $0x490] ss:$24 sps:$4 sm:$0xff]  }
 0x129   : > { %1136 = vmatpush1.bf16.msra.mxu1 %v4494_v20  ;;  %v4575_v20 = vld [vmem:[#allocation8 + $0x780] ss:$24 sps:$4 sm:$0xff]  }
 0x12a   : > { %1780 = vmatpush1.bf16.msra.mxu0 %v4497_v21  ;;  %1137 = vmatprep.subr.bf16.mxu1 %v4502_v22  ;;  %v4580_v21 = vld [vmem:[#allocation8 + $0x4c4] ss:$24 sps:$4 sm:$0xff]   ;;  %v4583_v22 = vld [vmem:[#allocation8 + $0x7b4] ss:$24 sps:$4 sm:$0xff]  }
 0x12b   : > { %1781 = vmatprep.subr.bf16.mxu0 %v4505_v23  ;;  %v4578_v23 = vld [vmem:[#allocation8 + $0x4c0] ss:$24 sps:$4 sm:$0xff]  }
 0x12d   : > { %1138 = vmatpush1.bf16.msra.mxu1 %v4500_v24  ;;  %v4581_v24 = vld [vmem:[#allocation8 + $0x7b0] ss:$24 sps:$4 sm:$0xff]  }
 0x12e   : > { %1782 = vmatpush1.bf16.msra.mxu0 %v4503_v25  ;;  %1139 = vmatprep.subr.bf16.mxu1 %v4508_v26  ;;  %v4586_v25 = vld [vmem:[#allocation8 + $0x4f4] ss:$24 sps:$4 sm:$0xff]   ;;  %v4589_v26 = vld [vmem:[#allocation8 + $0x7e4] ss:$24 sps:$4 sm:$0xff]  }
 0x12f   : > { %1783 = vmatprep.subr.bf16.mxu0 %v4511_v27  ;;  %v4584_v27 = vld [vmem:[#allocation8 + $0x4f0] ss:$24 sps:$4 sm:$0xff]  }
 0x131   : > { %1140 = vmatpush1.bf16.msra.mxu1 %v4506_v28  ;;  %v4587_v28 = vld [vmem:[#allocation8 + $0x7e0] ss:$24 sps:$4 sm:$0xff]  }
 0x132   : > { %1784 = vmatpush1.bf16.msra.mxu0 %v4509_v29  ;;  %1141 = vmatprep.subr.bf16.mxu1 %v4514_v30  ;;  %v4592_v29 = vld [vmem:[#allocation8 + $0x524] ss:$24 sps:$4 sm:$0xff]   ;;  %v4595_v30 = vld [vmem:[#allocation8 + $0x814] ss:$24 sps:$4 sm:$0xff]  }
 0x133   : > { %1785 = vmatprep.subr.bf16.mxu0 %v4517_v31  ;;  %v4590_v31 = vld [vmem:[#allocation8 + $0x520] ss:$24 sps:$4 sm:$0xff]  }
 0x135   : > { %1142 = vmatpush1.bf16.msra.mxu1 %v4512_v33  ;;  %v4593_v33 = vld [vmem:[#allocation8 + $0x810] ss:$24 sps:$4 sm:$0xff]  }
 0x136   : > { %1786 = vmatpush1.bf16.msra.mxu0 %v4515_v35  ;;  %1143 = vmatprep.subr.bf16.mxu1 %v4520_v36  ;;  %v4598_v35 = vld [vmem:[#allocation8 + $0x554] ss:$24 sps:$4 sm:$0xff]   ;;  %v4601_v36 = vld [vmem:[#allocation8 + $0x844] ss:$24 sps:$4 sm:$0xff]  }
 0x137   : > { %1787 = vmatprep.subr.bf16.mxu0 %v4523_v37  ;;  %v4596_v37 = vld [vmem:[#allocation8 + $0x550] ss:$24 sps:$4 sm:$0xff]  }
 0x139   : > { %1144 = vmatpush1.bf16.msra.mxu1 %v4518_v38  ;;  %v4599_v38 = vld [vmem:[#allocation8 + $0x840] ss:$24 sps:$4 sm:$0xff]  }
 0x13a   : > { %1788 = vmatpush1.bf16.msra.mxu0 %v4521_v39  ;;  %1154 = vmatprep.subr.bf16.mxu1 %v4526_v40  ;;  %v4604_v39 = vld [vmem:[#allocation8 + $0x584] ss:$24 sps:$4 sm:$0xff]   ;;  %v4607_v40 = vld [vmem:[#allocation8 + $0x874] ss:$24 sps:$4 sm:$0xff]  }
 0x13b   : > { %2398 = vmatprep.subr.bf16.mxu0 %v4529_v41  ;;  %v4602_v41 = vld [vmem:[#allocation8 + $0x580] ss:$24 sps:$4 sm:$0xff]  }
 0x13c   : > { %1146 = vmatmul.mubr.bf16.vlgmr.msra.gmra.mrb[4].mxu1 %v5483_v32 }
 0x13d   : > { %1790 = vmatmul.mubr.bf16.vlgmr.msra.gmra.mrb[4].mxu0 %v5485_v34  ;;  %1155 = vmatpush1.bf16.msra.mxu1 %v4524_v42  ;;  %v1803_v42 = vrot.slane %v5493_v50, %v5460_v48  ;;  %v4616_v50 = vld [vmem:[#allocation8 + $0x5e4] ss:$24 sps:$4 sm:$0xff]  }
 0x13e   : > { %2399 = vmatpush1.bf16.msra.mxu0 %v4527_v43  ;;  %1156 = vmatprep.subr.bf16.mxu1 %v4532_v44  ;;  %v4605_v43 = vld [vmem:[#allocation8 + $0x870] ss:$24 sps:$4 sm:$0xff]   ;;  %v4610_v44 = vld [vmem:[#allocation8 + $0x5b4] ss:$24 sps:$4 sm:$0xff]  }
 0x13f   : > { %2400 = vmatprep.subr.bf16.mxu0 %v4535_v45  ;;  %1186 = vmatprep.mubr.bf16.mxu1 %v5478_v18  ;;  %v4553_v18 = vld [vmem:[#allocation8 + $0x6c4] ss:$24 sps:$4 sm:$0xff]  }
 0x140   : > { %2430 = vmatprep.mubr.bf16.mxu0 %v5500_v63  ;;  %v4613_v45 = vld [vmem:[#allocation8 + $0x8a4] ss:$24 sps:$4 sm:$0xff]  }
 0x141   : > { %1157 = vmatpush1.bf16.msra.mxu1 %v4530_v46  ;;  %v4608_v46 = vld [vmem:[#allocation8 + $0x5b0] ss:$24 sps:$4 sm:$0xff]  }
 0x142   : > { %2401 = vmatpush1.bf16.msra.mxu0 %v4533_v49  ;;  %1158 = vmatprep.subr.bf16.mxu1 %v4538_v51  ;;  %v5506_v49 = vld [vmem:[%s5437_s8] sm:$0xff] }
 0x143   : > { %2402 = vmatprep.subr.bf16.mxu0 %v4541_v55  ;;  %v1810_v51 = vmul.f32 %v5506_v49, %v1803_v42  ;;  %v1812_v55 = vmul.f32 %v5510_v54, %v1803_v42  ;;  %v4688_v42 = vld [vmem:[#allocation8 + $0x21c] ss:$24 sps:$4 sm:$0xff]  }
 0x145   : > { %1159 = vmatpush1.bf16.msra.mxu1 %v4536_v58  ;;  %v4614_v58 = vld [vmem:[#allocation8 + $0x5e0] ss:$24 sps:$4 sm:$0xff]  }
 0x146   : > { %2403 = vmatpush1.bf16.msra.mxu0 %v4539_v59  ;;  %1160 = vmatprep.subr.bf16.mxu1 %v4544_v60  ;;  %v1814_v59 = vpack.c.bf16 %v1812_v55, %v1810_v51  ;;  %v4617_v60 = vld [vmem:[#allocation8 + $0x8d0] ss:$24 sps:$4 sm:$0xff]   ;;  %v4694_v51 = vld [vmem:[#allocation8 + $0x24c] ss:$24 sps:$4 sm:$0xff]  }
 0x147   : > { %2404 = vmatprep.subr.bf16.mxu0 %v4547_v62  ;;  %v4625_v62 = vld [vmem:[#allocation8 + $0x614] ss:$24 sps:$4 sm:$0xff]  }
 0x148   : > { %v4697_v55 = vld [vmem:[#allocation8 + $0x854] ss:$24 sps:$4 sm:$0xff]  }
 0x149   : > { %1161 = vmatpush1.bf16.msra.mxu1 %v4542_v0  ;;  %v4620_v0 = vld [vmem:[#allocation8 + $0x8] ss:$24 sps:$4 sm:$0xff]  }
 0x14a   : > { %2405 = vmatpush1.bf16.msra.mxu0 %v4545_v1  ;;  %1162 = vmatprep.subr.bf16.mxu1 %v4550_v52  ;;  %v5513_v1 = vrot.slane %v1814_v59, 1  ;;  %v4623_v52 = vld [vmem:[#allocation8 + $0x610] ss:$24 sps:$4 sm:$0xff]   ;;  %v4703_v59 = vld [vmem:[#allocation8 + $0x884] ss:$24 sps:$4 sm:$0xff]  }
 0x14b   : > { %2406 = vmatprep.subr.bf16.mxu0 %v4553_v18  ;;  %v4628_v18 = vld [vmem:[#allocation8 + $0x3c] ss:$24 sps:$4 sm:$0xff]  }
 0x14d   : > { %1163 = vmatpush1.bf16.msra.mxu1 %v4548_v53  ;;  %v4631_v53 = vld [vmem:[#allocation8 + $0x644] ss:$24 sps:$4 sm:$0xff]  }
 0x14e   : > { %2407 = vmatpush1.bf16.msra.mxu0 %v4551_v2  ;;  %1164 = vmatprep.subr.bf16.mxu1 %v4556_v3  ;;  %v4626_v2 = vld [vmem:[#allocation8 + $0x38] ss:$24 sps:$4 sm:$0xff]  }
 0x14f   : > { %2408 = vmatprep.subr.bf16.mxu0 %v4559_v4  ;;  %v4629_v3 = vld [vmem:[#allocation8 + $0x640] ss:$24 sps:$4 sm:$0xff]   ;;  %v4634_v4 = vld [vmem:[#allocation8 + $0x6c] ss:$24 sps:$4 sm:$0xff]  }
 0x151   : > { %1165 = vmatpush1.bf16.msra.mxu1 %v4554_v5  ;;  %v4637_v5 = vld [vmem:[#allocation8 + $0x674] ss:$24 sps:$4 sm:$0xff]  }
 0x152   : > { %2409 = vmatpush1.bf16.msra.mxu0 %v4557_v6  ;;  %1166 = vmatprep.subr.bf16.mxu1 %v4562_v7  ;;  %v4632_v6 = vld [vmem:[#allocation8 + $0x68] ss:$24 sps:$4 sm:$0xff]  }
 0x153   : > { %2410 = vmatprep.subr.bf16.mxu0 %v4565_v8  ;;  %v4635_v7 = vld [vmem:[#allocation8 + $0x670] ss:$24 sps:$4 sm:$0xff]   ;;  %v4643_v8 = vld [vmem:[#allocation8 + $0x6a4] ss:$24 sps:$4 sm:$0xff]  }
 0x155   : > { %1167 = vmatpush1.bf16.msra.mxu1 %v4560_v9  ;;  %v4638_v9 = vld [vmem:[#allocation8 + $0x98] ss:$24 sps:$4 sm:$0xff]  }
 0x156   : > { %2411 = vmatpush1.bf16.msra.mxu0 %v4563_v10  ;;  %1168 = vmatprep.subr.bf16.mxu1 %v4568_v11  ;;  %v4641_v10 = vld [vmem:[#allocation8 + $0x6a0] ss:$24 sps:$4 sm:$0xff]   ;;  %v4646_v11 = vld [vmem:[#allocation8 + $0xcc] ss:$24 sps:$4 sm:$0xff]  }
 0x157   : > { %2412 = vmatprep.subr.bf16.mxu0 %v4571_v12  ;;  %v4649_v12 = vld [vmem:[#allocation8 + $0x6d4] ss:$24 sps:$4 sm:$0xff]  }
 0x159   : > { %1169 = vmatpush1.bf16.msra.mxu1 %v4566_v14  ;;  %v4644_v14 = vld [vmem:[#allocation8 + $0xc8] ss:$24 sps:$4 sm:$0xff]  }
 0x15a   : > { %2413 = vmatpush1.bf16.msra.mxu0 %v4569_v15  ;;  %1170 = vmatprep.subr.bf16.mxu1 %v4574_v16  ;;  %v4652_v15 = vld [vmem:[#allocation8 + $0xfc] ss:$24 sps:$4 sm:$0xff]  }
 0x15b   : > { %2414 = vmatprep.subr.bf16.mxu0 %v4577_v17  ;;  %v4655_v16 = vld [vmem:[#allocation8 + $0x704] ss:$24 sps:$4 sm:$0xff]   ;;  %v4650_v17 = vld [vmem:[#allocation8 + $0xf8] ss:$24 sps:$4 sm:$0xff]  }
 0x15d   : > { %1171 = vmatpush1.bf16.msra.mxu1 %v4572_v19  ;;  %v4653_v19 = vld [vmem:[#allocation8 + $0x700] ss:$24 sps:$4 sm:$0xff]  }
 0x15e   : > { %2415 = vmatpush1.bf16.msra.mxu0 %v4575_v20  ;;  %1172 = vmatprep.subr.bf16.mxu1 %v4580_v21  ;;  %v4658_v20 = vld [vmem:[#allocation8 + $0x12c] ss:$24 sps:$4 sm:$0xff]  }
 0x15f   : > { %2416 = vmatprep.subr.bf16.mxu0 %v4583_v22  ;;  %v4661_v21 = vld [vmem:[#allocation8 + $0x734] ss:$24 sps:$4 sm:$0xff]   ;;  %v4656_v22 = vld [vmem:[#allocation8 + $0x128] ss:$24 sps:$4 sm:$0xff]  }
 0x161   : > { %1173 = vmatpush1.bf16.msra.mxu1 %v4578_v23  ;;  %v4659_v23 = vld [vmem:[#allocation8 + $0x730] ss:$24 sps:$4 sm:$0xff]  }
 0x162   : > { %2417 = vmatpush1.bf16.msra.mxu0 %v4581_v24  ;;  %1174 = vmatprep.subr.bf16.mxu1 %v4586_v25  ;;  %v4664_v24 = vld [vmem:[#allocation8 + $0x15c] ss:$24 sps:$4 sm:$0xff]  }
 0x163   : > { %2418 = vmatprep.subr.bf16.mxu0 %v4589_v26  ;;  %v4667_v25 = vld [vmem:[#allocation8 + $0x764] ss:$24 sps:$4 sm:$0xff]   ;;  %v4662_v26 = vld [vmem:[#allocation8 + $0x158] ss:$24 sps:$4 sm:$0xff]  }
 0x165   : > { %1175 = vmatpush1.bf16.msra.mxu1 %v4584_v27  ;;  %v4665_v27 = vld [vmem:[#allocation8 + $0x760] ss:$24 sps:$4 sm:$0xff]  }
 0x166   : > { %2419 = vmatpush1.bf16.msra.mxu0 %v4587_v28  ;;  %1176 = vmatprep.subr.bf16.mxu1 %v4592_v29  ;;  %v4670_v28 = vld [vmem:[#allocation8 + $0x18c] ss:$24 sps:$4 sm:$0xff]  }
 0x167   : > { %2420 = vmatprep.subr.bf16.mxu0 %v4595_v30  ;;  %v4673_v29 = vld [vmem:[#allocation8 + $0x794] ss:$24 sps:$4 sm:$0xff]   ;;  %v4668_v30 = vld [vmem:[#allocation8 + $0x188] ss:$24 sps:$4 sm:$0xff]  }
 0x169   : > { %1177 = vmatpush1.bf16.msra.mxu1 %v4590_v31  ;;  %v4671_v31 = vld [vmem:[#allocation8 + $0x790] ss:$24 sps:$4 sm:$0xff]  }
 0x16a   : > { %2421 = vmatpush1.bf16.msra.mxu0 %v4593_v33  ;;  %1178 = vmatprep.subr.bf16.mxu1 %v4598_v35  ;;  %v4676_v33 = vld [vmem:[#allocation8 + $0x1bc] ss:$24 sps:$4 sm:$0xff]  }
 0x16b   : > { %2422 = vmatprep.subr.bf16.mxu0 %v4601_v36  ;;  %v4679_v35 = vld [vmem:[#allocation8 + $0x7c4] ss:$24 sps:$4 sm:$0xff]   ;;  %v4674_v36 = vld [vmem:[#allocation8 + $0x1b8] ss:$24 sps:$4 sm:$0xff]  }
 0x16d   : > { %1179 = vmatpush1.bf16.msra.mxu1 %v4596_v37  ;;  %v4677_v37 = vld [vmem:[#allocation8 + $0x7c0] ss:$24 sps:$4 sm:$0xff]  }
 0x16e   : > { %2423 = vmatpush1.bf16.msra.mxu0 %v4599_v38  ;;  %1180 = vmatprep.subr.bf16.mxu1 %v4604_v39  ;;  %v4682_v38 = vld [vmem:[#allocation8 + $0x1ec] ss:$24 sps:$4 sm:$0xff]  }
 0x16f   : > { %2424 = vmatprep.subr.bf16.mxu0 %v4607_v40  ;;  %v4685_v39 = vld [vmem:[#allocation8 + $0x7f4] ss:$24 sps:$4 sm:$0xff]   ;;  %v4680_v40 = vld [vmem:[#allocation8 + $0x1e8] ss:$24 sps:$4 sm:$0xff]  }
 0x171   : > { %1181 = vmatpush1.bf16.msra.mxu1 %v4602_v41  ;;  %v4683_v41 = vld [vmem:[#allocation8 + $0x7f0] ss:$24 sps:$4 sm:$0xff]  }
 0x172   : > { %2425 = vmatpush1.bf16.msra.mxu0 %v4605_v43  ;;  %1182 = vmatprep.subr.bf16.mxu1 %v4610_v44  ;;  %v4691_v43 = vld [vmem:[#allocation8 + $0x824] ss:$24 sps:$4 sm:$0xff]  }
 0x173   : > { %2426 = vmatprep.subr.bf16.mxu0 %v4613_v45  ;;  %v5519_v44 = vld [vmem:[#allocation7 + $0x6] sm:$0x3]  ;;  %v4686_v45 = vld [vmem:[#allocation8 + $0x218] ss:$24 sps:$4 sm:$0xff]  }
 0x175   : > { %1183 = vmatpush1.bf16.msra.mxu1 %v4608_v46  ;;  %v4689_v46 = vld [vmem:[#allocation8 + $0x820] ss:$24 sps:$4 sm:$0xff]  }
 0x176   : > { %2427 = vmatpush1.bf16.msra.mxu0 %v4611_v56  ;;  %1184 = vmatprep.subr.bf16.mxu1 %v4616_v50  ;;  %v2536_v56 = vrot.slane %v5519_v44, %v5458_v47  ;;  %v4692_v50 = vld [vmem:[#allocation8 + $0x248] ss:$24 sps:$4 sm:$0xff]   ;;  %v4709_v47 = vld [vmem:[#allocation8 + $0x8b4] ss:$24 sps:$4 sm:$0xff]  }
 0x177   : > { %2428 = vmatprep.subr.bf16.mxu0 %v4619_v57  ;;  %v4695_v57 = vld [vmem:[#allocation8 + $0x850] ss:$24 sps:$4 sm:$0xff]  }
 0x179   : > { %1185 = vmatpush1.bf16.msra.mxu1 %v4614_v58  ;;  %v4700_v58 = vld [vmem:[#allocation8 + $0x27c] ss:$24 sps:$4 sm:$0xff]  }
 0x17a   : > { %2429 = vmatpush1.bf16.msra.mxu0 %v4617_v60  ;;  %1716 = vmatprep.subr.bf16.mxu1 %v4622_v61  ;;  %v4918_v60 = vld [vmem:[%s5437_s8 + $0x8] sm:$0xff] }
 0x17b   : > { %2480 = vmatprep.subr.bf16.mxu0 %v4625_v62  ;;  %v2540_v61 = vmul.f32 %v4918_v60, %v2536_v56  ;;  %v4919_v62 = vld [vmem:[%s5444_s2 + $0x8] sm:$0xff] }
 0x17c   : > { %1187 = vmatmul.mubr.bf16.vlgmr.msra.gmra.mrb[8].mxu1 %v5483_v32  ;;  %v4640_v32 = vld [vmem:[#allocation8 + $0x9c] ss:$24 sps:$4 sm:$0xff]   ;;  %v4767_v60 = vld [vmem:[#allocation8 + $0xa80] ss:$24 sps:$4 sm:$0xff]  }
 0x17d   : > { %2431 = vmatmul.mubr.bf16.vlgmr.msra.gmra.mrb[0].mxu0 %v5513_v1  ;;  %1717 = vmatpush1.bf16.msra.mxu1 %v4620_v0  ;;  %v2542_v0 = vmul.f32 %v4919_v62, %v2536_v56  ;;  %v4758_v56 = vld [vmem:[#allocation8 + $0x758] ss:$24 sps:$4 sm:$0xff]   ;;  %v4775_v62 = vld [vmem:[#allocation8 + $0xab4] ss:$24 sps:$4 sm:$0xff]  }
 0x17e   : > { %2481 = vmatpush1.bf16.msra.mxu0 %v4623_v52  ;;  %1718 = vmatprep.subr.bf16.mxu1 %v4628_v18  ;;  %v4698_v52 = vld [vmem:[#allocation8 + $0x278] ss:$24 sps:$4 sm:$0xff]  }
 0x17f   : > { %2482 = vmatprep.subr.bf16.mxu0 %v4631_v53  ;;  %1748 = vmatprep.mubr.bf16.mxu1 %v5476_v13  ;;  %v4647_v13 = vld [vmem:[#allocation8 + $0x6d0] ss:$24 sps:$4 sm:$0xff]   ;;  %v4701_v18 = vld [vmem:[#allocation8 + $0x880] ss:$24 sps:$4 sm:$0xff]   ;;  %v4706_v53 = vld [vmem:[#allocation8 + $0x2ac] ss:$24 sps:$4 sm:$0xff]  }
 0x180   : > { %2512 = vmatprep.mubr.bf16.mxu0 %v5500_v63 }
 0x181   : > { %1719 = vmatpush1.bf16.msra.mxu1 %v4626_v2  ;;  %v2544_v2 = vpack.c.bf16 %v2542_v0, %v2540_v61  ;;  %v4772_v61 = vld [vmem:[#allocation8 + $0x7bc] ss:$24 sps:$4 sm:$0xff]   ;;  %v4770_v0 = vld [vmem:[#allocation8 + $0x7b8] ss:$24 sps:$4 sm:$0xff]  }
 0x182   : > { %2483 = vmatpush1.bf16.msra.mxu0 %v4629_v3  ;;  %1720 = vmatprep.subr.bf16.mxu1 %v4634_v4  ;;  %v4704_v3 = vld [vmem:[#allocation8 + $0x2a8] ss:$24 sps:$4 sm:$0xff]  }
 0x183   : > { %2484 = vmatprep.subr.bf16.mxu0 %v4637_v5  ;;  %v4707_v4 = vld [vmem:[#allocation8 + $0x8b0] ss:$24 sps:$4 sm:$0xff]   ;;  %v4712_v5 = vld [vmem:[#allocation8 + $0x2dc] ss:$24 sps:$4 sm:$0xff]  }
 0x185   : > { %1721 = vmatpush1.bf16.msra.mxu1 %v4632_v6  ;;  %v4715_v6 = vld [vmem:[#allocation8 + $0x8e4] ss:$24 sps:$4 sm:$0xff]  }
 0x186   : > { %2485 = vmatpush1.bf16.msra.mxu0 %v4635_v7  ;;  %1722 = vmatprep.subr.bf16.mxu1 %v4640_v32  ;;  %v2650_v7 = vshrl.u32 %v2544_v2, 16  ;;  %v2653_v32 = vshll.u32 %v2544_v2, 16  ;;  %v4779_v2 = vld [vmem:[#allocation8 + $0xae0] ss:$24 sps:$4 sm:$0xff]  }
 0x187   : > { %2486 = vmatprep.subr.bf16.mxu0 %v4643_v8  ;;  %v4710_v8 = vld [vmem:[#allocation8 + $0x2d8] ss:$24 sps:$4 sm:$0xff]  }
 0x189   : > { %1723 = vmatpush1.bf16.msra.mxu1 %v4638_v9  ;;  %v4713_v9 = vld [vmem:[#allocation8 + $0x8e0] ss:$24 sps:$4 sm:$0xff]  }
 0x18a   : > { %2487 = vmatpush1.bf16.msra.mxu0 %v4641_v10  ;;  %1724 = vmatprep.subr.bf16.mxu1 %v4646_v11  ;;  %v4718_v10 = vld [vmem:[#allocation8 + $0x60c] ss:$24 sps:$4 sm:$0xff]  }
 0x18b   : > { %2488 = vmatprep.subr.bf16.mxu0 %v4649_v12  ;;  %v4721_v11 = vld [vmem:[#allocation8 + $0x904] ss:$24 sps:$4 sm:$0xff]   ;;  %v2652_v12 = vrot.slane %v2650_v7, 1  ;;  %v4785_v7 = vld [vmem:[#allocation8 + $0xb10] ss:$24 sps:$4 sm:$0xff]  }
 0x18d   : > { %1725 = vmatpush1.bf16.msra.mxu1 %v4644_v14  ;;  %v2655_v14 = vrot.slane %v2653_v32, 2  ;;  %v4790_v32 = vld [vmem:[#allocation8 + $0x84c] ss:$24 sps:$4 sm:$0xff]  }
 0x18e   : > { %2489 = vmatpush1.bf16.msra.mxu0 %v4647_v13  ;;  %1726 = vmatprep.subr.bf16.mxu1 %v4652_v15  ;;  %v4716_v13 = vld [vmem:[#allocation8 + $0x608] ss:$24 sps:$4 sm:$0xff]  }
 0x18f   : > { %2490 = vmatprep.subr.bf16.mxu0 %v4655_v16  ;;  %v4719_v15 = vld [vmem:[#allocation8 + $0x900] ss:$24 sps:$4 sm:$0xff]   ;;  %v4724_v16 = vld [vmem:[#allocation8 + $0x63c] ss:$24 sps:$4 sm:$0xff]  }
 0x191   : > { %1727 = vmatpush1.bf16.msra.mxu1 %v4650_v17  ;;  %v4727_v17 = vld [vmem:[#allocation8 + $0x934] ss:$24 sps:$4 sm:$0xff]  }
 0x192   : > { %2491 = vmatpush1.bf16.msra.mxu0 %v4653_v19  ;;  %1728 = vmatprep.subr.bf16.mxu1 %v4658_v20  ;;  %v5525_v19 = vor.u32 %v2655_v14, %v2652_v12  ;;  %v4722_v20 = vld [vmem:[#allocation8 + $0x638] ss:$24 sps:$4 sm:$0xff]   ;;  %v4796_v14 = vld [vmem:[#allocation8 + $0x87c] ss:$24 sps:$4 sm:$0xff]  }
 0x193   : > { %2492 = vmatprep.subr.bf16.mxu0 %v4661_v21  ;;  %v4725_v21 = vld [vmem:[#allocation8 + $0x930] ss:$24 sps:$4 sm:$0xff]   ;;  %v4791_v12 = vld [vmem:[#allocation8 + $0xb40] ss:$24 sps:$4 sm:$0xff]  }
 0x195   : > { %1729 = vmatpush1.bf16.msra.mxu1 %v4656_v22  ;;  %v4730_v22 = vld [vmem:[#allocation8 + $0x66c] ss:$24 sps:$4 sm:$0xff]  }
 0x196   : > { %2493 = vmatpush1.bf16.msra.mxu0 %v4659_v23  ;;  %1730 = vmatprep.subr.bf16.mxu1 %v4664_v24  ;;  %v4733_v23 = vld [vmem:[#allocation8 + $0x964] ss:$24 sps:$4 sm:$0xff]   ;;  %v4728_v24 = vld [vmem:[#allocation8 + $0x668] ss:$24 sps:$4 sm:$0xff]  }
 0x197   : > { %2494 = vmatprep.subr.bf16.mxu0 %v4667_v25  ;;  %v4731_v25 = vld [vmem:[#allocation8 + $0x960] ss:$24 sps:$4 sm:$0xff]  }
 0x199   : > { %1731 = vmatpush1.bf16.msra.mxu1 %v4662_v26  ;;  %v4739_v26 = vld [vmem:[#allocation8 + $0x994] ss:$24 sps:$4 sm:$0xff]  }
 0x19a   : > { %2495 = vmatpush1.bf16.msra.mxu0 %v4665_v27  ;;  %1732 = vmatprep.subr.bf16.mxu1 %v4670_v28  ;;  %v4734_v27 = vld [vmem:[#allocation8 + $0x698] ss:$24 sps:$4 sm:$0xff]  }
 0x19b   : > { %2496 = vmatprep.subr.bf16.mxu0 %v4673_v29  ;;  %v4737_v28 = vld [vmem:[#allocation8 + $0x990] ss:$24 sps:$4 sm:$0xff]   ;;  %v4742_v29 = vld [vmem:[#allocation8 + $0x6cc] ss:$24 sps:$4 sm:$0xff]  }
 0x19d   : > { %1733 = vmatpush1.bf16.msra.mxu1 %v4668_v30  ;;  %v4745_v30 = vld [vmem:[#allocation8 + $0x9c4] ss:$24 sps:$4 sm:$0xff]  }
 0x19e   : > { %2497 = vmatpush1.bf16.msra.mxu0 %v4671_v31  ;;  %1734 = vmatprep.subr.bf16.mxu1 %v4676_v33  ;;  %v4740_v31 = vld [vmem:[#allocation8 + $0x6c8] ss:$24 sps:$4 sm:$0xff]   ;;  %v4748_v33 = vld [vmem:[#allocation8 + $0x6fc] ss:$24 sps:$4 sm:$0xff]  }
 0x19f   : > { %2498 = vmatprep.subr.bf16.mxu0 %v4679_v35  ;;  %v4751_v35 = vld [vmem:[#allocation8 + $0x9f4] ss:$24 sps:$4 sm:$0xff]  }
 0x1a1   : > { %1735 = vmatpush1.bf16.msra.mxu1 %v4674_v36  ;;  %v4746_v36 = vld [vmem:[#allocation8 + $0x6f8] ss:$24 sps:$4 sm:$0xff]  }
 0x1a2   : > { %2499 = vmatpush1.bf16.msra.mxu0 %v4677_v37  ;;  %1736 = vmatprep.subr.bf16.mxu1 %v4682_v38  ;;  %v4749_v37 = vld [vmem:[#allocation8 + $0x9f0] ss:$24 sps:$4 sm:$0xff]   ;;  %v4754_v38 = vld [vmem:[#allocation8 + $0x72c] ss:$24 sps:$4 sm:$0xff]  }
 0x1a3   : > { %2500 = vmatprep.subr.bf16.mxu0 %v4685_v39  ;;  %v4757_v39 = vld [vmem:[#allocation8 + $0xa24] ss:$24 sps:$4 sm:$0xff]  }
 0x1a5   : > { %1737 = vmatpush1.bf16.msra.mxu1 %v4680_v40 }
 0x1a6   : > { %2501 = vmatpush1.bf16.msra.mxu0 %v4683_v41  ;;  %1738 = vmatprep.subr.bf16.mxu1 %v4688_v42 }
 0x1a7   : > { %2502 = vmatprep.subr.bf16.mxu0 %v4691_v43  ;;  %v4752_v43 = vld [vmem:[#allocation8 + $0x728] ss:$24 sps:$4 sm:$0xff]  }
 0x1a9   : > { %1739 = vmatpush1.bf16.msra.mxu1 %v4686_v45  ;;  %v4755_v45 = vld [vmem:[#allocation8 + $0xa20] ss:$24 sps:$4 sm:$0xff]  }
 0x1aa   : > { %2503 = vmatpush1.bf16.msra.mxu0 %v4689_v46  ;;  %1740 = vmatprep.subr.bf16.mxu1 %v4694_v51  ;;  %v4760_v51 = vld [vmem:[#allocation8 + $0x75c] ss:$24 sps:$4 sm:$0xff]  }
 0x1ab   : > { %2504 = vmatprep.subr.bf16.mxu0 %v4697_v55  ;;  %v4763_v55 = vld [vmem:[#allocation8 + $0xa54] ss:$24 sps:$4 sm:$0xff]  }
 0x1ad   : > { %1741 = vmatpush1.bf16.msra.mxu1 %v4692_v50  ;;  %v4761_v50 = vld [vmem:[#allocation8 + $0xa50] ss:$24 sps:$4 sm:$0xff]  }
 0x1ae   : > { %2505 = vmatpush1.bf16.msra.mxu0 %v4695_v57  ;;  %1742 = vmatprep.subr.bf16.mxu1 %v4700_v58  ;;  %v4766_v57 = vld [vmem:[#allocation8 + $0x78c] ss:$24 sps:$4 sm:$0xff]  }
 0x1af   : > { %2506 = vmatprep.subr.bf16.mxu0 %v4703_v59  ;;  %v4769_v58 = vld [vmem:[#allocation8 + $0xa84] ss:$24 sps:$4 sm:$0xff]   ;;  %v4764_v59 = vld [vmem:[#allocation8 + $0x788] ss:$24 sps:$4 sm:$0xff]  }
 0x1b1   : > { %1743 = vmatpush1.bf16.msra.mxu1 %v4698_v52  ;;  %v4773_v52 = vld [vmem:[#allocation8 + $0xab0] ss:$24 sps:$4 sm:$0xff]  }
 0x1b2   : > { %2507 = vmatpush1.bf16.msra.mxu0 %v4701_v18  ;;  %1744 = vmatprep.subr.bf16.mxu1 %v4706_v53  ;;  %v4778_v18 = vld [vmem:[#allocation8 + $0x7ec] ss:$24 sps:$4 sm:$0xff]  }
 0x1b3   : > { %2508 = vmatprep.subr.bf16.mxu0 %v4709_v47  ;;  %v4781_v53 = vld [vmem:[#allocation8 + $0xae4] ss:$24 sps:$4 sm:$0xff]   ;;  %v4776_v47 = vld [vmem:[#allocation8 + $0x7e8] ss:$24 sps:$4 sm:$0xff]  }
 0x1b5   : > { %1745 = vmatpush1.bf16.msra.mxu1 %v4704_v3  ;;  %v4784_v3 = vld [vmem:[#allocation8 + $0x81c] ss:$24 sps:$4 sm:$0xff]  }
 0x1b6   : > { %2509 = vmatpush1.bf16.msra.mxu0 %v4707_v4  ;;  %1746 = vmatprep.subr.bf16.mxu1 %v4712_v5  ;;  %v4787_v4 = vld [vmem:[#allocation8 + $0xb14] ss:$24 sps:$4 sm:$0xff]   ;;  %v2532_v5 = vrot.slane %v5519_v44, %v5460_v48 }
 0x1b7   : > { %2510 = vmatprep.subr.bf16.mxu0 %v4715_v6  ;;  %v4782_v6 = vld [vmem:[#allocation8 + $0x818] ss:$24 sps:$4 sm:$0xff]   ;;  %v4799_v48 = vld [vmem:[#allocation8 + $0xb74] ss:$24 sps:$4 sm:$0xff]  }
 0x1b9   : > { %1747 = vmatpush1.bf16.msra.mxu1 %v4710_v8  ;;  %v4793_v8 = vld [vmem:[#allocation8 + $0xb44] ss:$24 sps:$4 sm:$0xff]  }
 0x1ba   : > { %2511 = vmatpush1.bf16.msra.mxu0 %v4713_v9  ;;  %2439 = vmatprep.subr.bf16.mxu1 %v4718_v10  ;;  %v2539_v9 = vmul.f32 %v5506_v49, %v2532_v5  ;;  %v2541_v10 = vmul.f32 %v5510_v54, %v2532_v5  ;;  %v4800_v54 = vld [vmem:[#allocation8 + $0x8a8] ss:$24 sps:$4 sm:$0xff]  }
 0x1bb   : > { %3139 = vmatprep.subr.bf16.mxu0 %v4721_v11  ;;  %v4788_v11 = vld [vmem:[#allocation8 + $0x848] ss:$24 sps:$4 sm:$0xff]  }
 0x1bc   : > { %1749 = vmatmul.mubr.bf16.vlgmr.msra.gmra.mrb[4].mxu1 %v5485_v34  ;;  %v4736_v34 = vld [vmem:[#allocation8 + $0x69c] ss:$24 sps:$4 sm:$0xff]   ;;  %v2543_v44 = vpack.c.bf16 %v2541_v10, %v2539_v9  ;;  %v4863_v5 = vld [vmem:[#allocation8 + $0xa90] ss:$24 sps:$4 sm:$0xff]   ;;  %v4874_v9 = vld [vmem:[#allocation8 + $0xaec] ss:$24 sps:$4 sm:$0xff]  }
 0x1bd   : > { %2513 = vmatmul.mubr.bf16.vlgmr.msra.gmra.mrb[4].mxu0 %v5513_v1  ;;  %2440 = vmatpush1.bf16.msra.mxu1 %v4716_v13  ;;  %v4794_v13 = vld [vmem:[#allocation8 + $0x878] ss:$24 sps:$4 sm:$0xff]   ;;  %v4877_v10 = vld [vmem:[#allocation8 + $0xaf4] ss:$24 sps:$4 sm:$0xff]  }
 0x1be   : > { %3140 = vmatpush1.bf16.msra.mxu0 %v4719_v15  ;;  %2441 = vmatprep.subr.bf16.mxu1 %v4724_v16  ;;  %v4797_v15 = vld [vmem:[#allocation8 + $0xb70] ss:$24 sps:$4 sm:$0xff]   ;;  %v4802_v16 = vld [vmem:[#allocation8 + $0x8ac] ss:$24 sps:$4 sm:$0xff]   ;;  %v2642_v49 = vshrl.u32 %v2543_v44, 16 }
 0x1bf   : > { %3141 = vmatprep.subr.bf16.mxu0 %v4727_v17  ;;  %3171 = vmatprep.mubr.bf16.mxu0 %v5525_v19  ;;  %v4805_v17 = vld [vmem:[#allocation8 + $0xba4] ss:$24 sps:$4 sm:$0xff]  }
 0x1c0   : > { %2471 = vmatprep.mubr.bf16.mxu1 %v5500_v63  ;;  %v4743_v63 = vld [vmem:[#allocation8 + $0x9c0] ss:$24 sps:$4 sm:$0xff]  }
 0x1c1   : > { %2442 = vmatpush1.bf16.msra.mxu1 %v4722_v20  ;;  %v2645_v20 = vshll.u32 %v2543_v44, 16  ;;  %v4878_v44 = vld [vmem:[#allocation8 + $0xb18] ss:$24 sps:$4 sm:$0xff]  }
 0x1c2   : > { %3142 = vmatpush1.bf16.msra.mxu0 %v4725_v21  ;;  %2443 = vmatprep.subr.bf16.mxu1 %v4730_v22  ;;  %v4803_v21 = vld [vmem:[#allocation8 + $0xba0] ss:$24 sps:$4 sm:$0xff]   ;;  %v4808_v22 = vld [vmem:[#allocation8 + $0x8dc] ss:$24 sps:$4 sm:$0xff]  }
 0x1c3   : > { %3143 = vmatprep.subr.bf16.mxu0 %v4733_v23  ;;  %v4811_v23 = vld [vmem:[#allocation8 + $0xbd4] ss:$24 sps:$4 sm:$0xff]  }
 0x1c5   : > { %2444 = vmatpush1.bf16.msra.mxu1 %v4728_v24  ;;  %v2644_v24 = vrot.slane %v2642_v49, 1  ;;  %v4887_v49 = vld [vmem:[#allocation8 + $0xb50] ss:$24 sps:$4 sm:$0xff]  }
 0x1c6   : > { %3144 = vmatpush1.bf16.msra.mxu0 %v4731_v25  ;;  %2445 = vmatprep.subr.bf16.mxu1 %v4736_v34  ;;  %v2647_v25 = vrot.slane %v2645_v20, 2  ;;  %v4806_v34 = vld [vmem:[#allocation8 + $0x8d8] ss:$24 sps:$4 sm:$0xff]   ;;  %v4892_v20 = vld [vmem:[#allocation8 + $0xb7c] ss:$24 sps:$4 sm:$0xff]  }
 0x1c7   : > { %3145 = vmatprep.subr.bf16.mxu0 %v4739_v26  ;;  %v4809_v26 = vld [vmem:[#allocation8 + $0xbd0] ss:$24 sps:$4 sm:$0xff]  }
 0x1c9   : > { %2446 = vmatpush1.bf16.msra.mxu1 %v4734_v27  ;;  %v4814_v27 = vld [vmem:[#allocation8 + $0x90c] ss:$24 sps:$4 sm:$0xff]  }
 0x1ca   : > { %3146 = vmatpush1.bf16.msra.mxu0 %v4737_v28  ;;  %2447 = vmatprep.subr.bf16.mxu1 %v4742_v29  ;;  %v4817_v28 = vld [vmem:[#allocation8 + $0x914] ss:$24 sps:$4 sm:$0xff]   ;;  %v5539_v29 = vor.u32 %v2647_v25, %v2644_v24  ;;  %v4896_v25 = vld [vmem:[#allocation8 + $0xba8] ss:$24 sps:$4 sm:$0xff]  }
 0x1cb   : > { %3147 = vmatprep.subr.bf16.mxu0 %v4745_v30  ;;  %v4812_v30 = vld [vmem:[#allocation8 + $0x908] ss:$24 sps:$4 sm:$0xff]   ;;  %v4901_v24 = vld [vmem:[#allocation8 + $0xbb4] ss:$24 sps:$4 sm:$0xff]  }
 0x1cd   : > { %2448 = vmatpush1.bf16.msra.mxu1 %v4740_v31  ;;  %v4815_v31 = vld [vmem:[#allocation8 + $0x910] ss:$24 sps:$4 sm:$0xff]  }
 0x1ce   : > { %3148 = vmatpush1.bf16.msra.mxu0 %v4743_v63  ;;  %2449 = vmatprep.subr.bf16.mxu1 %v4748_v33  ;;  %v4820_v63 = vld [vmem:[#allocation8 + $0x93c] ss:$24 sps:$4 sm:$0xff]  }
 0x1cf   : > { %3149 = vmatprep.subr.bf16.mxu0 %v4751_v35  ;;  %v5531_v40 = vpop.f32.mrb[0].mxu1  ;;  %v4823_v33 = vld [vmem:[#allocation8 + $0x944] ss:$24 sps:$4 sm:$0xff]   ;;  %v4818_v35 = vld [vmem:[#allocation8 + $0x938] ss:$24 sps:$4 sm:$0xff]  }
 0x1d0   : > { %v5533_v41 = vpop.f32.mrb[1].mxu1 }
 0x1d1   : > { %v1110_v42 = vpop.f32.mrb[2].mxu1  ;;  %2450 = vmatpush1.bf16.msra.mxu1 %v4746_v36  ;;  %v4821_v36 = vld [vmem:[#allocation8 + $0x940] ss:$24 sps:$4 sm:$0xff]  }
 0x1d2   : > { %3150 = vmatpush1.bf16.msra.mxu0 %v4749_v37  ;;  %v1111_v46 = vpop.f32.mrb[3].mxu1  ;;  %2451 = vmatprep.subr.bf16.mxu1 %v4754_v38  ;;  %v4826_v37 = vld [vmem:[#allocation8 + $0x96c] ss:$24 sps:$4 sm:$0xff]   ;;  %v4827_v42 = vld [vmem:[#allocation8 + $0x970] ss:$24 sps:$4 sm:$0xff]  }
 0x1d3   : > { %3151 = vmatprep.subr.bf16.mxu0 %v4757_v39  ;;  %v4829_v38 = vld [vmem:[#allocation8 + $0x974] ss:$24 sps:$4 sm:$0xff]   ;;  %v4824_v39 = vld [vmem:[#allocation8 + $0x968] ss:$24 sps:$4 sm:$0xff]  }
 0x1d4   : > { %v4833_v46 = vld [vmem:[#allocation8 + $0x9a0] ss:$24 sps:$4 sm:$0xff]  }
 0x1d5   : > { %2452 = vmatpush1.bf16.msra.mxu1 %v4752_v43  ;;  %v4832_v43 = vld [vmem:[#allocation8 + $0x99c] ss:$24 sps:$4 sm:$0xff]  }
 0x1d6   : > { %3152 = vmatpush1.bf16.msra.mxu0 %v4755_v45  ;;  %2453 = vmatprep.subr.bf16.mxu1 %v4760_v51  ;;  %v4830_v45 = vld [vmem:[#allocation8 + $0x998] ss:$24 sps:$4 sm:$0xff]   ;;  %v4838_v51 = vld [vmem:[#allocation8 + $0x9cc] ss:$24 sps:$4 sm:$0xff]  }
 0x1d7   : > { %3153 = vmatprep.subr.bf16.mxu0 %v4763_v55  ;;  %v4841_v55 = vld [vmem:[#allocation8 + $0x9d4] ss:$24 sps:$4 sm:$0xff]  }
 0x1d9   : > { %2454 = vmatpush1.bf16.msra.mxu1 %v4758_v56  ;;  %v4836_v56 = vld [vmem:[#allocation8 + $0x9c8] ss:$24 sps:$4 sm:$0xff]  }
 0x1da   : > { %3154 = vmatpush1.bf16.msra.mxu0 %v4761_v50  ;;  %2455 = vmatprep.subr.bf16.mxu1 %v4766_v57  ;;  %v4844_v50 = vld [vmem:[#allocation8 + $0x9fc] ss:$24 sps:$4 sm:$0xff]  }
 0x1db   : > { %3155 = vmatprep.subr.bf16.mxu0 %v4769_v58  ;;  %v4847_v57 = vld [vmem:[#allocation8 + $0xa04] ss:$24 sps:$4 sm:$0xff]   ;;  %v4842_v58 = vld [vmem:[#allocation8 + $0x9f8] ss:$24 sps:$4 sm:$0xff]  }
 0x1dd   : > { %2456 = vmatpush1.bf16.msra.mxu1 %v4764_v59  ;;  %v4845_v59 = vld [vmem:[#allocation8 + $0xa00] ss:$24 sps:$4 sm:$0xff]  }
 0x1de   : > { %3156 = vmatpush1.bf16.msra.mxu0 %v4767_v60  ;;  %2457 = vmatprep.subr.bf16.mxu1 %v4772_v61  ;;  %v4850_v60 = vld [vmem:[#allocation8 + $0xa2c] ss:$24 sps:$4 sm:$0xff]  }
 0x1df   : > { %3157 = vmatprep.subr.bf16.mxu0 %v4775_v62  ;;  %v4853_v61 = vld [vmem:[#allocation8 + $0xa34] ss:$24 sps:$4 sm:$0xff]   ;;  %v4848_v62 = vld [vmem:[#allocation8 + $0xa28] ss:$24 sps:$4 sm:$0xff]  }
 0x1e1   : > { %2458 = vmatpush1.bf16.msra.mxu1 %v4770_v0  ;;  %v4851_v0 = vld [vmem:[#allocation8 + $0xa30] ss:$24 sps:$4 sm:$0xff]  }
 0x1e2   : > { %3158 = vmatpush1.bf16.msra.mxu0 %v4773_v52  ;;  %2459 = vmatprep.subr.bf16.mxu1 %v4778_v18  ;;  %v4856_v52 = vld [vmem:[#allocation8 + $0xa5c] ss:$24 sps:$4 sm:$0xff]  }
 0x1e3   : > { %3159 = vmatprep.subr.bf16.mxu0 %v4781_v53  ;;  %v4859_v18 = vld [vmem:[#allocation8 + $0xa64] ss:$24 sps:$4 sm:$0xff]   ;;  %v4854_v53 = vld [vmem:[#allocation8 + $0xa58] ss:$24 sps:$4 sm:$0xff]  }
 0x1e5   : > { %2460 = vmatpush1.bf16.msra.mxu1 %v4776_v47  ;;  %v4857_v47 = vld [vmem:[#allocation8 + $0xa60] ss:$24 sps:$4 sm:$0xff]  }
 0x1e6   : > { %3160 = vmatpush1.bf16.msra.mxu0 %v4779_v2  ;;  %2461 = vmatprep.subr.bf16.mxu1 %v4784_v3  ;;  %v4862_v2 = vld [vmem:[#allocation8 + $0xa8c] ss:$24 sps:$4 sm:$0xff]  }
 0x1e7   : > { %3161 = vmatprep.subr.bf16.mxu0 %v4787_v4  ;;  %v4865_v3 = vld [vmem:[#allocation8 + $0xa94] ss:$24 sps:$4 sm:$0xff]   ;;  %v4860_v4 = vld [vmem:[#allocation8 + $0xa88] ss:$24 sps:$4 sm:$0xff]  }
 0x1e9   : > { %2462 = vmatpush1.bf16.msra.mxu1 %v4782_v6  ;;  %v4868_v6 = vld [vmem:[#allocation8 + $0xabc] ss:$24 sps:$4 sm:$0xff]  }
 0x1ea   : > { %3162 = vmatpush1.bf16.msra.mxu0 %v4785_v7  ;;  %2463 = vmatprep.subr.bf16.mxu1 %v4790_v32  ;;  %v4871_v7 = vld [vmem:[#allocation8 + $0xac4] ss:$24 sps:$4 sm:$0xff]   ;;  %v4866_v32 = vld [vmem:[#allocation8 + $0xab8] ss:$24 sps:$4 sm:$0xff]  }
 0x1eb   : > { %3163 = vmatprep.subr.bf16.mxu0 %v4793_v8  ;;  %v4869_v8 = vld [vmem:[#allocation8 + $0xac0] ss:$24 sps:$4 sm:$0xff]  }
 0x1ed   : > { %2464 = vmatpush1.bf16.msra.mxu1 %v4788_v11  ;;  %v4872_v11 = vld [vmem:[#allocation8 + $0xae8] ss:$24 sps:$4 sm:$0xff]  }
 0x1ee   : > { %3164 = vmatpush1.bf16.msra.mxu0 %v4791_v12  ;;  %2465 = vmatprep.subr.bf16.mxu1 %v4796_v14  ;;  %v4875_v12 = vld [vmem:[#allocation8 + $0xaf0] ss:$24 sps:$4 sm:$0xff]   ;;  %v4880_v14 = vld [vmem:[#allocation8 + $0xb1c] ss:$24 sps:$4 sm:$0xff]  }
 0x1ef   : > { %3165 = vmatprep.subr.bf16.mxu0 %v4799_v48  ;;  %v4883_v48 = vld [vmem:[#allocation8 + $0xb24] ss:$24 sps:$4 sm:$0xff]  }
 0x1f1   : > { %2466 = vmatpush1.bf16.msra.mxu1 %v4794_v13  ;;  %v4881_v13 = vld [vmem:[#allocation8 + $0xb20] ss:$24 sps:$4 sm:$0xff]  }
 0x1f2   : > { %3166 = vmatpush1.bf16.msra.mxu0 %v4797_v15  ;;  %2467 = vmatprep.subr.bf16.mxu1 %v4802_v16  ;;  %v4886_v15 = vld [vmem:[#allocation8 + $0xb4c] ss:$24 sps:$4 sm:$0xff]  }
 0x1f3   : > { %3167 = vmatprep.subr.bf16.mxu0 %v4805_v17  ;;  %v4889_v16 = vld [vmem:[#allocation8 + $0xb54] ss:$24 sps:$4 sm:$0xff]   ;;  %v4884_v17 = vld [vmem:[#allocation8 + $0xb48] ss:$24 sps:$4 sm:$0xff]  }
 0x1f5   : > { %2468 = vmatpush1.bf16.msra.mxu1 %v4800_v54  ;;  %v4895_v54 = vld [vmem:[#allocation8 + $0xb84] ss:$24 sps:$4 sm:$0xff]  }
 0x1f6   : > { %3168 = vmatpush1.bf16.msra.mxu0 %v4803_v21  ;;  %2469 = vmatprep.subr.bf16.mxu1 %v4808_v22  ;;  %v4890_v21 = vld [vmem:[#allocation8 + $0xb78] ss:$24 sps:$4 sm:$0xff]  }
 0x1f7   : > { %3169 = vmatprep.subr.bf16.mxu0 %v4811_v23  ;;  %v4893_v22 = vld [vmem:[#allocation8 + $0xb80] ss:$24 sps:$4 sm:$0xff]   ;;  %v4898_v23 = vld [vmem:[#allocation8 + $0xbac] ss:$24 sps:$4 sm:$0xff]  }
 0x1f9   : > { %2470 = vmatpush1.bf16.msra.mxu1 %v4806_v34  ;;  %v4899_v34 = vld [vmem:[#allocation8 + $0xbb0] ss:$24 sps:$4 sm:$0xff]  }
 0x1fa   : > { %3170 = vmatpush1.bf16.msra.mxu0 %v4809_v26  ;;  %3180 = vmatprep.subr.bf16.mxu1 %v4814_v27  ;;  %v4904_v26 = vld [vmem:[#allocation8 + $0xbdc] ss:$24 sps:$4 sm:$0xff]  }
 0x1fb   : > { %3221 = vmatprep.subr.bf16.mxu0 %v4817_v28  ;;  %v4907_v27 = vld [vmem:[#allocation8 + $0xbe4] ss:$24 sps:$4 sm:$0xff]   ;;  %v4902_v28 = vld [vmem:[#allocation8 + $0xbd8] ss:$24 sps:$4 sm:$0xff]  }
 0x1fc   : > { %2472 = vmatmul.mubr.bf16.vlgmr.msra.gmra.mrb[4].mxu1 %v5513_v1  ;;  %v4835_v1 = vld [vmem:[#allocation8 + $0x9a4] ss:$24 sps:$4 sm:$0xff]  }
 0x1fd   : > { %3172 = vmatmul.mubr.bf16.vlgmr.msra.gmra.mrb[0].mxu0 %v5539_v29  ;;  %3181 = vmatpush1.bf16.msra.mxu1 %v4812_v30  ;;  %v4905_v30 = vld [vmem:[#allocation8 + $0xbe0] ss:$24 sps:$4 sm:$0xff]  }
 0x1fe   : > { %3222 = vmatpush1.bf16.msra.mxu0 %v4815_v31  ;;  %3182 = vmatprep.subr.bf16.mxu1 %v4820_v63 }
 0x1ff   : > { %3223 = vmatprep.subr.bf16.mxu0 %v4823_v33  ;;  %3212 = vmatprep.mubr.bf16.mxu1 %v5525_v19 }
 0x200   : > { %3253 = vmatprep.mubr.bf16.mxu0 %v5525_v19  ;;  %v4839_v19 = vld [vmem:[#allocation8 + $0x9d0] ss:$24 sps:$4 sm:$0xff]  }
 0x201   : > { %3183 = vmatpush1.bf16.msra.mxu1 %v4818_v35 }
 0x202   : > { %3224 = vmatpush1.bf16.msra.mxu0 %v4821_v36  ;;  %3184 = vmatprep.subr.bf16.mxu1 %v4826_v37  ;;  %v3314_v36 = vld [vmem:[#allocation10 + $0x80] sm:$0xff]  ;;  %v3315_v37 = vld [vmem:[#allocation10 + $0x88] sm:$0xff] }
 0x203   : > { %3225 = vmatprep.subr.bf16.mxu0 %v4829_v38  ;;  %v3298_v38 = vld [vmem:[#allocation10] sm:$0xff] }
 0x205   : > { %3185 = vmatpush1.bf16.msra.mxu1 %v4824_v39  ;;  %v4139_v39 = vpack.c.bf16 %v3315_v37, %v3314_v36  ;;  %v3342_v36 = vld [vmem:[#allocation10 + $0x160] sm:$0xff]  ;;  %v3343_v37 = vld [vmem:[#allocation10 + $0x168] sm:$0xff] }
 0x206   : > { %3226 = vmatpush1.bf16.msra.mxu0 %v4827_v42  ;;  %3186 = vmatprep.subr.bf16.mxu1 %v4832_v43  ;;  %v5170_v42 = vmov 0.0|0.0   ;;  %v3299_v43 = vld [vmem:[#allocation10 + $0x8] sm:$0xff] }
 0x207   : > { %3227 = vmatprep.subr.bf16.mxu0 %v4835_v1  ;;  %v3330_v1 = vld [vmem:[#allocation10 + $0x100] sm:$0xff] }
 0x209   : > { %3187 = vmatpush1.bf16.msra.mxu1 %v4830_v45  ;;  %v3331_v45 = vld [vmem:[#allocation10 + $0x108] sm:$0xff] }
 0x20a   : > { %3228 = vmatpush1.bf16.msra.mxu0 %v4833_v46  ;;  %3188 = vmatprep.subr.bf16.mxu1 %v4838_v51  ;;  %v4141_v46 = vpack.c.bf16 %v3299_v43, %v3298_v38  ;;  %v4172_v51 = vpack.c.bf16 %v3331_v45, %v3330_v1  ;;  %v3329_v43 = vld [vmem:[#allocation10 + $0xf8] sm:$0xff]  ;;  %v4190_v1 = vpack.c.bf16 %v3343_v37, %v3342_v36 }
 0x20b   : > { %3229 = vmatprep.subr.bf16.mxu0 %v4841_v55  ;;  %v3316_v55 = vld [vmem:[#allocation10 + $0x90] sm:$0xff] }
 0x20d   : > { %3189 = vmatpush1.bf16.msra.mxu1 %v4836_v56  ;;  %v3300_v56 = vld [vmem:[#allocation10 + $0x10] sm:$0xff] }
 0x20e   : > { %3230 = vmatpush1.bf16.msra.mxu0 %v4839_v19  ;;  %3190 = vmatprep.subr.bf16.mxu1 %v4844_v50  ;;  %v3301_v50 = vld [vmem:[#allocation10 + $0x18] sm:$0xff] }
 0x20f   : > { %3231 = vmatprep.subr.bf16.mxu0 %v4847_v57  ;;  %v3332_v57 = vld [vmem:[#allocation10 + $0x110] sm:$0xff] }
 0x211   : > { %3191 = vmatpush1.bf16.msra.mxu1 %v4842_v58  ;;  %v3333_v58 = vld [vmem:[#allocation10 + $0x118] sm:$0xff] }
 0x212   : > { %3232 = vmatpush1.bf16.msra.mxu0 %v4845_v59  ;;  %3192 = vmatprep.subr.bf16.mxu1 %v4850_v60  ;;  %v4145_v59 = vpack.c.bf16 %v3301_v50, %v3300_v56  ;;  %v4175_v60 = vpack.c.bf16 %v3333_v58, %v3332_v57  ;;  %v5172_v50 = vmov 0.0  }
 0x213   : > { %3233 = vmatprep.subr.bf16.mxu0 %v4853_v61  ;;  %v3318_v61 = vld [vmem:[#allocation10 + $0xa0] sm:$0xff] }
 0x215   : > { %3193 = vmatpush1.bf16.msra.mxu1 %v4848_v62  ;;  %v3319_v62 = vld [vmem:[#allocation10 + $0xa8] sm:$0xff] }
 0x216   : > { %3234 = vmatpush1.bf16.msra.mxu0 %v4851_v0  ;;  %3194 = vmatprep.subr.bf16.mxu1 %v4856_v52  ;;  %v4147_v0 = vpack.c.bf16 %v3319_v62, %v3318_v61  ;;  %v3302_v52 = vld [vmem:[#allocation10 + $0x20] sm:$0xff] }
 0x217   : > { %3235 = vmatprep.subr.bf16.mxu0 %v4859_v18  ;;  %v3303_v18 = vld [vmem:[#allocation10 + $0x28] sm:$0xff] }
 0x219   : > { %3195 = vmatpush1.bf16.msra.mxu1 %v4854_v53  ;;  %v3334_v53 = vld [vmem:[#allocation10 + $0x120] sm:$0xff] }
 0x21a   : > { %3236 = vmatpush1.bf16.msra.mxu0 %v4857_v47  ;;  %3196 = vmatprep.subr.bf16.mxu1 %v4862_v2  ;;  %v4149_v47 = vpack.c.bf16 %v3303_v18, %v3302_v52  ;;  %v3335_v2 = vld [vmem:[#allocation10 + $0x128] sm:$0xff] }
 0x21b   : > { %3237 = vmatprep.subr.bf16.mxu0 %v4865_v3  ;;  %v4178_v3 = vpack.c.bf16 %v3335_v2, %v3334_v53 }
 0x21d   : > { %3197 = vmatpush1.bf16.msra.mxu1 %v4860_v4  ;;  %v3320_v4 = vld [vmem:[#allocation10 + $0xb0] sm:$0xff] }
 0x21e   : > { %3238 = vmatpush1.bf16.msra.mxu0 %v4863_v5  ;;  %3198 = vmatprep.subr.bf16.mxu1 %v4868_v6  ;;  %v3321_v5 = vld [vmem:[#allocation10 + $0xb8] sm:$0xff] }
 0x21f   : > { %3239 = vmatprep.subr.bf16.mxu0 %v4871_v7  ;;  %v4151_v6 = vpack.c.bf16 %v3321_v5, %v3320_v4  ;;  %v3304_v7 = vld [vmem:[#allocation10 + $0x30] sm:$0xff] }
 0x221   : > { %3199 = vmatpush1.bf16.msra.mxu1 %v4866_v32  ;;  %v3305_v32 = vld [vmem:[#allocation10 + $0x38] sm:$0xff] }
 0x222   : > { %3240 = vmatpush1.bf16.msra.mxu0 %v4869_v8  ;;  %3200 = vmatprep.subr.bf16.mxu1 %v4874_v9  ;;  %v3336_v8 = vld [vmem:[#allocation10 + $0x130] sm:$0xff]  ;;  %v4153_v9 = vpack.c.bf16 %v3305_v32, %v3304_v7 }
 0x223   : > { %3241 = vmatprep.subr.bf16.mxu0 %v4877_v10  ;;  %v3337_v10 = vld [vmem:[#allocation10 + $0x138] sm:$0xff] }
 0x225   : > { %3201 = vmatpush1.bf16.msra.mxu1 %v4872_v11  ;;  %v4181_v11 = vpack.c.bf16 %v3337_v10, %v3336_v8 }
 0x226   : > { %3242 = vmatpush1.bf16.msra.mxu0 %v4875_v12  ;;  %3202 = vmatprep.subr.bf16.mxu1 %v4880_v14  ;;  %v3322_v12 = vld [vmem:[#allocation10 + $0xc0] sm:$0xff]  ;;  %v3323_v14 = vld [vmem:[#allocation10 + $0xc8] sm:$0xff] }
 0x227   : > { %3243 = vmatprep.subr.bf16.mxu0 %v4883_v48  ;;  %v4155_v48 = vpack.c.bf16 %v3323_v14, %v3322_v12 }
 0x229   : > { %3203 = vmatpush1.bf16.msra.mxu1 %v4878_v44  ;;  %v3306_v44 = vld [vmem:[#allocation10 + $0x40] sm:$0xff] }
 0x22a   : > { %3244 = vmatpush1.bf16.msra.mxu0 %v4881_v13  ;;  %3204 = vmatprep.subr.bf16.mxu1 %v4886_v15  ;;  %v3307_v13 = vld [vmem:[#allocation10 + $0x48] sm:$0xff]  ;;  %v3338_v15 = vld [vmem:[#allocation10 + $0x140] sm:$0xff] }
 0x22b   : > { %3245 = vmatprep.subr.bf16.mxu0 %v4889_v16  ;;  %v4157_v16 = vpack.c.bf16 %v3307_v13, %v3306_v44 }
 0x22d   : > { %3205 = vmatpush1.bf16.msra.mxu1 %v4884_v17  ;;  %v3339_v17 = vld [vmem:[#allocation10 + $0x148] sm:$0xff] }
 0x22e   : > { %3246 = vmatpush1.bf16.msra.mxu0 %v4887_v49  ;;  %3206 = vmatprep.subr.bf16.mxu1 %v4892_v20  ;;  %v4184_v49 = vpack.c.bf16 %v3339_v17, %v3338_v15  ;;  %v3324_v20 = vld [vmem:[#allocation10 + $0xd0] sm:$0xff] }
 0x22f   : > { %3247 = vmatprep.subr.bf16.mxu0 %v4895_v54  ;;  %v3325_v54 = vld [vmem:[#allocation10 + $0xd8] sm:$0xff] }
 0x231   : > { %3207 = vmatpush1.bf16.msra.mxu1 %v4890_v21  ;;  %v3308_v21 = vld [vmem:[#allocation10 + $0x50] sm:$0xff] }
 0x232   : > { %3248 = vmatpush1.bf16.msra.mxu0 %v4893_v22  ;;  %3208 = vmatprep.subr.bf16.mxu1 %v4898_v23  ;;  %v4159_v22 = vpack.c.bf16 %v3325_v54, %v3324_v20  ;;  %v3309_v23 = vld [vmem:[#allocation10 + $0x58] sm:$0xff] }
 0x233   : > { %3249 = vmatprep.subr.bf16.mxu0 %v4901_v24  ;;  %v3340_v24 = vld [vmem:[#allocation10 + $0x150] sm:$0xff] }
 0x235   : > { %3209 = vmatpush1.bf16.msra.mxu1 %v4896_v25  ;;  %v3341_v25 = vld [vmem:[#allocation10 + $0x158] sm:$0xff] }
 0x236   : > { %3250 = vmatpush1.bf16.msra.mxu0 %v4899_v34  ;;  %3210 = vmatprep.subr.bf16.mxu1 %v4904_v26  ;;  %v4161_v34 = vpack.c.bf16 %v3309_v23, %v3308_v21  ;;  %v4187_v26 = vpack.c.bf16 %v3341_v25, %v3340_v24 }
 0x237   : > { %3251 = vmatprep.subr.bf16.mxu0 %v4907_v27  ;;  %v3326_v27 = vld [vmem:[#allocation10 + $0xe0] sm:$0xff] }
 0x239   : > { %3211 = vmatpush1.bf16.msra.mxu1 %v4902_v28  ;;  %v3327_v28 = vld [vmem:[#allocation10 + $0xe8] sm:$0xff] }
 0x23a   : > { %3252 = vmatpush1.bf16.msra.mxu0 %v4905_v30  ;;  %4171 = vmatprep.subr.bf16.mxu1 %v5170_v42  ;;  %v3310_v30 = vld [vmem:[#allocation10 + $0x60] sm:$0xff] }
 0x23b   : > { %4140 = vmatprep.subr.bf16.mxu0 %v4139_v39  ;;  %v3328_v39 = vld [vmem:[#allocation10 + $0xf0] sm:$0xff] }
 0x23c   : > { %3213 = vmatmul.mubr.bf16.vlgmr.msra.gmra.mrb[4].mxu1 %v5539_v29  ;;  %v4167_v45 = vpack.c.bf16 %v3329_v43, %v3328_v39 }
 0x23d   : > { %3254 = vmatmul.mubr.bf16.vlgmr.msra.gmra.mrb[4].mxu0 %v5539_v29  ;;  %v3317_v29 = vld [vmem:[#allocation10 + $0x98] sm:$0xff]  ;;  %4173 = vmatpush3.bf16.msra.mxu1 %v4172_v51 }
 0x23e   : > { %v4143_v19 = vpack.c.bf16 %v3317_v29, %v3316_v55  ;;  %4142 = vmatpush3.bf16.msra.mxu0 %v4141_v46  ;;  %4174 = vmatprep.subr.bf16.mxu1 %v5170_v42  ;;  %v3312_v46 = vld [vmem:[#allocation10 + $0x70] sm:$0xff]  ;;  %v3313_v51 = vld [vmem:[#allocation10 + $0x78] sm:$0xff] }
 0x23f   : > { %v3344_v55 = vld [vmem:[#allocation10 + $0x170] sm:$0xff]  ;;  %v3345_v29 = vld [vmem:[#allocation10 + $0x178] sm:$0xff]  ;;  %v4169_v56 = vpack.c.bf16 %v3313_v51, %v3312_v46  ;;  %4136 = vmatprep.mubr.msk.f32.mxu1 %vm5171_vm0, %v5172_v50 }
 0x240   : > { %4144 = vmatprep.subr.bf16.mxu0 %v4143_v19  ;;  %v4193_v19 = vpack.c.bf16 %v3345_v29, %v3344_v55 }
 0x241   : > { %4176 = vmatpush3.bf16.msra.mxu1 %v4175_v60 }
 0x242   : > { %4146 = vmatpush3.bf16.msra.mxu0 %v4145_v59  ;;  %4177 = vmatprep.subr.bf16.mxu1 %v5170_v42 }
 0x243   : > { %4148 = vmatprep.subr.bf16.mxu0 %v4147_v0 }
 0x245   : > { %4179 = vmatpush3.bf16.msra.mxu1 %v4178_v3 }
 0x246   : > { %4150 = vmatpush3.bf16.msra.mxu0 %v4149_v47  ;;  %4180 = vmatprep.subr.bf16.mxu1 %v5170_v42 }
 0x247   : > { %4152 = vmatprep.subr.bf16.mxu0 %v4151_v6 }
 0x249   : > { %4182 = vmatpush3.bf16.msra.mxu1 %v4181_v11 }
 0x24a   : > { %4154 = vmatpush3.bf16.msra.mxu0 %v4153_v9  ;;  %4183 = vmatprep.subr.bf16.mxu1 %v5170_v42 }
 0x24b   : > { %4156 = vmatprep.subr.bf16.mxu0 %v4155_v48 }
 0x24d   : > { %4185 = vmatpush3.bf16.msra.mxu1 %v4184_v49 }
 0x24e   : > { %4158 = vmatpush3.bf16.msra.mxu0 %v4157_v16  ;;  %4186 = vmatprep.subr.bf16.mxu1 %v5170_v42 }
 0x24f   : > { %v5547_v31 = vpop.f32.mrb[8].mxu1  ;;  %4160 = vmatprep.subr.bf16.mxu0 %v4159_v22 }
 0x250   : > { %v5549_v63 = vpop.f32.mrb[9].mxu1 }
 0x251   : > { %v1192_v33 = vpop.f32.mrb[10].mxu1  ;;  %4188 = vmatpush3.bf16.msra.mxu1 %v4187_v26 }
 0x252   : > { %v1193_v35 = vpop.f32.mrb[11].mxu1  ;;  %v4163_v33 = vpack.c.bf16 %v3327_v28, %v3326_v27  ;;  %4162 = vmatpush3.bf16.msra.mxu0 %v4161_v34  ;;  %4189 = vmatprep.subr.bf16.mxu1 %v5170_v42 }
 0x253   : > { %v3311_v35 = vld [vmem:[#allocation10 + $0x68] sm:$0xff] }
 0x254   : > { %v4165_v38 = vpack.c.bf16 %v3311_v35, %v3310_v30  ;;  %4164 = vmatprep.subr.bf16.mxu0 %v4163_v33 }
 0x255   : > { %4191 = vmatpush3.bf16.msra.mxu1 %v4190_v1 }
 0x256   : > { %4166 = vmatpush3.bf16.msra.mxu0 %v4165_v38  ;;  %4192 = vmatprep.subr.bf16.mxu1 %v5170_v42 }
 0x257   : > { %4168 = vmatprep.subr.bf16.mxu0 %v4167_v45 }
 0x259   : > { %4194 = vmatpush3.bf16.msra.mxu1 %v4193_v19 }
 0x25a   : > { %4170 = vmatpush3.bf16.msra.mxu0 %v4169_v56 }
 0x2d0   : > { %v3173_v57 = vpop.f32.mrb[0].mxu0 }
 0x2d1   : > { %v4195_v58 = vadd.f32 %v3173_v57, %v5531_v40  ;;  %v3175_v59 = vpop.f32.mrb[1].mxu0 }
 0x2d2   : > { %v4196_v60 = vadd.f32 %v3175_v59, %v5533_v41  ;;  %v3177_v61 = vpop.f32.mrb[2].mxu0 }
 0x2d3   : > { %v3178_v62 = vpop.f32.mrb[3].mxu0  ;;  %v3268_v42 = vmul.f32 %v4195_v58, %v4195_v58 }
 0x2d4   : > { %v3269_v6 = vmul.f32 %v4196_v60, %v4196_v60 }
 0x30f   : > { %v3214_v0 = vpop.f32.mrb[4].mxu1 }
 0x310   : > { %v3255_v52 = vpop.f32.mrb[4].mxu0  ;;  %v3216_v53 = vpop.f32.mrb[5].mxu1  ;;  %v3270_v8 = vmul.f32 %v3214_v0, %v3214_v0 }
 0x311   : > { %v4197_v18 = vadd.f32 %v3255_v52, %v5547_v31  ;;  %v3257_v47 = vpop.f32.mrb[5].mxu0  ;;  %v3271_v2 = vmul.f32 %v3216_v53, %v3216_v53  ;;  %v3218_v4 = vpop.f32.mrb[6].mxu1 }
 0x312   : > { %v4198_v3 = vadd.f32 %v3257_v47, %v5549_v63  ;;  %v3259_v5 = vpop.f32.mrb[6].mxu0  ;;  %v3219_v40 = vpop.f32.mrb[7].mxu1 }
 0x313   : > { %v3272_v7 = vmul.f32 %v4197_v18, %v4197_v18  ;;  %v3260_v32 = vpop.f32.mrb[7].mxu0  ;;  %v3274_v41 = vadd.f32 %v3271_v2, %v3268_v42 }
 0x314   : > { %v3273_v9 = vmul.f32 %v4198_v3, %v4198_v3 }
 0x315   : > { %v3275_v10 = vadd.f32 %v3272_v7, %v3269_v6  ;;  %4908 = vrsqrt.f32 %v3274_v41  ;;  %vm3279_vm2 = vcmp.eq.f32.partialorder %v3274_v41, inf  ;;  %v3282_v17 = vand.u32 2147483648, %v3274_v41 }
 0x316   : > { %v3276_v11 = vadd.f32 %v3273_v9, %v3270_v8  ;;  %vm3281_vm5 = vcmp.eq.f32.partialorder %v3274_v41, 0.0 }
 0x317   : > { %4910 = vrsqrt.f32 %v3275_v10  ;;  %vm3286_vm1 = vcmp.eq.f32.partialorder %v3275_v10, inf  ;;  %vm3288_vm3 = vcmp.eq.f32.partialorder %v3275_v10, 0.0  ;;  %v3289_v63 = vand.u32 2147483648, %v3275_v10 }
 0x318   : > { %4912 = vrsqrt.f32 %v3276_v11  ;;  %vm3293_vm4 = vcmp.eq.f32.partialorder %v3276_v11, inf  ;;  %v3296_v49 = vand.u32 2147483648, %v3276_v11  ;;  %vm3295_vm6 = vcmp.eq.f32.partialorder %v3276_v11, 0.0 }
 0x31f   : > { %v4909_v31 = vpop.eup %4908 }
 0x320   : > { %v3278_v14 = vmul.f32 %v4909_v31, %v3274_v41 }
 0x321   : > { %v4911_v12 = vpop.eup %4910 }
 0x322   : > { %v4913_v48 = vpop.eup %4912  ;;  %v3285_v44 = vmul.f32 %v4911_v12, %v3275_v10  ;;  %v3280_v13 = vsel %vm3279_vm2, %v3274_v41, %v3278_v14 }
 0x323   : > { %v3292_v15 = vmul.f32 %v4913_v48, %v3276_v11  ;;  %v3283_v21 = vsel %vm3281_vm5, %v3282_v17, %v3280_v13 }
 0x324   : > { %v3287_v16 = vsel %vm3286_vm1, %v3275_v10, %v3285_v44 }
 0x325   : > { %v3290_v20 = vsel %vm3288_vm3, %v3289_v63, %v3287_v16  ;;  %v3294_v54 = vsel %vm3293_vm4, %v3276_v11, %v3292_v15 }
 0x326   : > { %3410 = vmatprep.mubr.f32.mxu0 %v3290_v20  ;;  %v3297_v22 = vsel %vm3295_vm6, %v3296_v49, %v3294_v54 }
 0x327   : > { %3411 = vmatmul.mubr.f32.vlgmr.msra.gmra.mrb[8].mxu0 %v3283_v21  ;;  %4137 = vmatmul.mubr.f32.vlgmr.msra.gmra.mrb[12].mxu1 %v3297_v22 }
 0x3fa   : > { %v4084_v23 = vpop.f32.mrb[8].mxu0  ;;  %v3482_v24 = vpop.f32.mrb[12].mxu1 }
 0x3fb   : > { %v4085_v25 = vpop.f32.mrb[9].mxu0  ;;  %v4138_v34 = vpop.f32.mrb[13].mxu1 }
 0x3fc   : > { %v4086_v26 = vadd.f32 %v4085_v25, %v4084_v23 }
 0x3fe   : > { %v3483_v27 = vadd.f32 %v4086_v26, %v3482_v24 }
 0x400   : > { %v3486_v28 = vmax.f32 %v3483_v27, 1e-05 }
 0x402   : > { %4914 = vlog2.f32 %v3486_v28 }
 0x40c   : > { %v4915_v30 = vpop.eup %4914 }
 0x40d   : > { %v3488_v33 = vmul.f32 0.6931472, %v4915_v30 }
 0x40f   : > { %3489 = vst [vmem:[%s344_s11] sm:$0xff] %v3488_v33 }
 0x410   : > { %5078 = shalt.err (!%p5075_p6)
}
 0x411   : > { %s5079_s15 = scalar_lea.hbm %s5568_s16, 128  ;;  %s5083_s6 = scalar_lea.hbm %s5622_s5, 256 }
 0x412   : > { %p5080_p2 = scmp.ne.s32.totalorder %s5568_s16, %s5079_s15  ;;  %p5084_p3 = scmp.lt.u32.totalorder %s5568_s16, %s5622_s5 }
 0x413   : > { %p5085_p11 = scmp.lt.u32.totalorder %s5083_s6, %s5079_s15  ;;  %p5087_p5 = scmp.lt.u32.totalorder %s5079_s15, %s5568_s16 }
 0x414   : > { %p5081_p1 = pnand %p5080_p2, %p5649_p10 }
 0x415   : > { %p5086_p0 = por %p5085_p11, %p5084_p3 }
 0x416   : > { %p5082_p8 = pneg %p5081_p1 }
 0x417   : > { %p5088_p13 = por %p5087_p5, %p5086_p0 }
 0x419   : > { %p5089_p9 = pnand %p5088_p13, %p5082_p8 }
 0x41b   : > { %5092 = shalt.err (!%p5089_p9)
}
 0x41c   : > { %4243 = dma.vmem_to_hbm [thread:$0]  (%p5649_p10), %s5570_s7, 128, %s5568_s16, %s3491_s30  }
 0x41d PF: > { %s3517_s28 = sand.u32 1, %s5139_s18   ;;  %p5650_p7 = scmp.ne.s32.totalorder %s5632_s27, 0 }
 0x41e   : > { %p5651_p12 = scmp.ge.s32.totalorder %s5159_s23, 2  ;;  %s3518_s2 = scalar_lea.sflag [#allocation4], %s3517_s28 }
 0x420   : > { %p4263_p4 = pnand %p5651_p12, %p5650_p7 }
 0x422   : > { %5134 = dma.done.wait (!%p4263_p4), %s3518_s2, 128  }
 0x423   : > { %5136 = vsyncadd (!%p4263_p4), %s3518_s2, 4294967168  ;;  %s25_s23 = sadd.s32 1, %s5159_s23   ;;  %s5652_s13 = sld [smem:[#allocation17_spill]] }
 0x424   : > { %p22_p6 = scmp.ge.s32.totalorder %s25_s23, 4   ;;  %s5653_s18 = smov %s5143_s19 }
 0x425   : > { %s5654_s19 = smov %s5147_s20  ;;  %s5655_s20 = smov %s5358_s17 }
 0x426   : > { %s5656_s21 = smov %s5155_s22  ;;  %24 = sbr.rel (!%p22_p6) target bundleno = 13 (0xd), region = 110 }
 0x429   : > { %s5657_s22 = smov %s5652_s13 }
 0x42d   :  { %3523 = vsyncpa [#allocation3], 1 }
 0x42e   :  { %3525 = vsyncpa [#allocation3 + $0x1], 1 }
 0x42f   :  { %3526 = vsyncpa [#allocation6], 1 }
 0x430   :  { %3528 = vsyncpa [#allocation6 + $0x1], 1 }
 0x431   :  { %3529 = vsyncpa [#allocation9], 1 }
 0x432   :  { %3530 = vsyncpa [#allocation4], 1 }
 0x433   :  { %3532 = vsyncpa [#allocation4 + $0x1], 1 }

</bundles_post_ra>
